<compile_context>
chip_gen: v7x
topology: tpu7x:2x2x1
jax: 0.10.0
libtpu: 0.0.40
codegen_flags: <defaults>
</compile_context>

<pallas_src>
import jax
import jax.numpy as jnp
from jax.experimental import pallas as pl
from jax.experimental.pallas import tpu as pltpu

EPS = 1e-5  # nn.LayerNorm default


def _expand_norm_shuffle_kernel(x_ref, w_ref, m1_ref, m2_ref, g_ref, b_ref, o_ref):
    # x_ref : (th*W, C)   f32   flattened pixels of `th` rows of the (B*H) axis
    # w_ref : (p, C, C)   bf16  expand weight, pre-split into p1 column slabs
    # m1_ref: (C, 8)      f32   group-average matrix (entries 1/c_out, zero-padded)
    # m2_ref: (8, C)      f32   0/1 group-broadcast matrix (zero-padded rows)
    # g_ref : (1, C)      f32   gamma tiled p (=p2 count) times
    # b_ref : (1, C)      f32   beta  tiled p times
    # o_ref : (th, p, W, C)     output block, already in final memory order
    th, p, W, C = o_ref.shape

    xb = x_ref[...].astype(jnp.bfloat16)      # cast once; reused by every p1 slab
    m1 = m1_ref[...]
    m2 = m2_ref[...]
    g = g_ref[...]
    b = b_ref[...]

    for p1 in range(p):                       # static unroll, p == 4
        # MXU: (th*W, C) @ (C, C) -> f32 accumulate.  This slab is exactly the set
        # of channels that land in output rows h*p + p1.
        y = jnp.dot(xb, w_ref[p1], preferred_element_type=jnp.float32)

        # Lane-dense grouped LayerNorm (groups = contiguous c_out chunks of C).
        # Two-pass mean/var via skinny MXU matmuls (MXU slot is otherwise idle).
        mu = jnp.dot(jnp.dot(y, m1, preferred_element_type=jnp.float32),
                     m2, preferred_element_type=jnp.float32)
        d = y - mu
        var = jnp.dot(jnp.dot(d * d, m1, preferred_element_type=jnp.float32),
                      m2, preferred_element_type=jnp.float32)
        ln = d * jax.lax.rsqrt(var + EPS) * g + b

        # Full-tile store: (th*W, C) -> (th, W, C) is layout-preserving (W % 8 == 0)
        # and the whole (th, p, W, C) block DMAs out as one contiguous HBM run.
        o_ref[:, p1, :, :] = ln.astype(o_ref.dtype).reshape(th, W, C)


def _vmem_plan(limit_override, budget_override):
    """Chip-aware VMEM limit / tile budget (v5e/v6e: 128 MiB phys, v7x: 64 MiB)."""
    if limit_override is not None and budget_override is not None:
        return limit_override, budget_override
    try:
        phys = int(getattr(pltpu.get_tpu_info(), "vmem_capacity_bytes", 64 * 2**20))
    except Exception:                       # unknown chip: assume the smallest (v7x)
        phys = 64 * 2**20
    if phys >= 100 * 2**20:                 # v5e / v6e
        limit, budget = 64 * 2**20, 44 * 2**20
    else:                                   # v7x or unknown
        limit, budget = 32 * 2**20, 20 * 2**20
    if limit_override is not None:
        limit = limit_override
        budget = min(budget, int(limit * 0.7))
    if budget_override is not None:
        budget = budget_override
    return limit, budget


def _pick_row_tile(n_rows, W, C, p, out_itemsize, budget_bytes):
    """Largest divisor of n_rows (= B*H) whose pipelined working set fits the VMEM
    budget, preferring an even grid count so both v7x TensorCores stay busy."""
    four_c = p * C
    resident = 2 * (p * C * C * 2 + C * 8 * 4 + 8 * C * 4 + 2 * C * 4)

    def fits(th):
        stream = 2 * (th * W * C * 4) + 2 * (th * p * W * C * out_itemsize)  # dbl-buffered I/O
        interm = (th * W * C * 2                      # bf16 copy of the x tile
                  + 3 * th * W * four_c * 4           # ~3 live f32 slabs across the p1 loop
                  + th * W * four_c * out_itemsize)   # down-cast values feeding the stores
        return resident + stream + interm <= budget_bytes

    divisors = [t for t in range(1, n_rows + 1) if n_rows % t == 0]
    fitting = [t for t in divisors if fits(t)]
    if not fitting:
        # TODO(synk): a single (B*H) row exceeds the budget (huge W*C); needs sub-row
        # tiling.  Fall back to th=1 and rely on vmem_limit_bytes headroom.
        return 1
    even = [t for t in fitting if (n_rows // t) % 2 == 0]
    return max(even) if even else max(fitting)


def final_patch_expand_2d(x, w, gamma, beta, *, dim_scale=4,
                          out_dtype=jnp.bfloat16,
                          vmem_limit_bytes=None, vmem_budget_bytes=None):
    """x: (B,H,W,C) f32. w: (C, dim_scale*C) used as x @ w. gamma/beta: (C//dim_scale,)."""
    B, H, W, C = x.shape
    p = dim_scale
    four_c = p * C
    c_out = C // p
    assert C % p == 0
    assert w.shape == (C, four_c)
    assert gamma.shape == (c_out,) and beta.shape == (c_out,)
    # TODO(synk): support W not divisible by 8 (needs padded blocks); typical vmamba
    # feature maps (W in {8, 56, 64, ...}) satisfy this.
    assert W % 8 == 0, "kernel assumes W % 8 == 0"

    limit, budget = _vmem_plan(vmem_limit_bytes, vmem_budget_bytes)

    # Expand weight pre-split into p1 column slabs: w3[j] = w[:, j*C:(j+1)*C].
    w3 = w.reshape(C, p, C).transpose(1, 0, 2).astype(jnp.bfloat16)

    # Group-average / group-broadcast matrices for the lane-dense LayerNorm
    # (per-p1 group g = contiguous channels [g*c_out, (g+1)*c_out); 1/c_out folded
    # in; group dim padded to >= 8 to keep MXU operand dims at full sublane tiles).
    G = max(p, 8)
    grp = jnp.arange(C, dtype=jnp.int32) // c_out
    gid = jnp.arange(G, dtype=jnp.int32)
    m1 = (grp[:, None] == gid[None, :]).astype(jnp.float32) / c_out   # (C, G)
    m2 = (gid[:, None] == grp[None, :]).astype(jnp.float32)           # (G, C)
    gt = jnp.tile(gamma.astype(jnp.float32), p).reshape(1, C)
    bt = jnp.tile(beta.astype(jnp.float32), p).reshape(1, C)

    n_rows = B * H
    out_itemsize = jnp.dtype(out_dtype).itemsize
    th = _pick_row_tile(n_rows, W, C, p, out_itemsize, budget)
    grid = (n_rows // th,)

    x2 = x.reshape(B * H * W, C)   # f32 in; cast to bf16 inside the kernel

    cost = pl.CostEstimate(
        flops=int(2 * B * H * W * C * four_c + 8 * B * H * W * four_c * G),
        transcendentals=int(B * H * W * four_c),
        bytes_accessed=int(x2.size * 4 + w3.size * 2
                           + B * H * W * four_c * out_itemsize),
    )

    out4 = pl.pallas_call(
        _expand_norm_shuffle_kernel,
        out_shape=jax.ShapeDtypeStruct((n_rows, p, W, C), out_dtype),
        grid_spec=pltpu.PrefetchScalarGridSpec(
            num_scalar_prefetch=0,
            grid=grid,
            in_specs=[
                pl.BlockSpec((th * W, C), lambda i: (i, 0)),
                # Constant-index-map residents (< 100 KiB total): fetched once.
                pl.BlockSpec((p, C, C), lambda i: (0, 0, 0)),
                pl.BlockSpec((C, G), lambda i: (0, 0)),
                pl.BlockSpec((G, C), lambda i: (0, 0)),
                pl.BlockSpec((1, C), lambda i: (0, 0)),
                pl.BlockSpec((1, C), lambda i: (0, 0)),
            ],
            out_specs=pl.BlockSpec((th, p, W, C), lambda i: (i, 0, 0, 0)),
        ),
        compiler_params=pltpu.CompilerParams(
            dimension_semantics=("parallel",),
            vmem_limit_bytes=limit,
        ),
        cost_estimate=cost,
    )(x2, w3, m1, m2, gt, bt)

    # (B*H, p1, W, C) rows are already in 'b (h p1) (w p2) c' memory order, so this
    # reshape is metadata-only (no transpose, no extra HBM pass).
    return out4.reshape(B, H * p, W * p, c_out)


def _reference(x, w, gamma, beta, dim_scale=4):
    # Mirror the kernel's bf16 matmul-input quantization so the comparison isolates
    # the kernel math rather than the dtype choice.
    B, H, W, C = x.shape
    c_out = C // dim_scale
    xq = x.astype(jnp.bfloat16).astype(jnp.float32)
    wq = w.astype(jnp.bfloat16).astype(jnp.float32)
    y = jnp.einsum("bhwc,cd->bhwd", xq, wq, precision=jax.lax.Precision.HIGHEST)
    y = y.reshape(B, H, W, dim_scale, dim_scale, c_out)
    y = y.transpose(0, 1, 3, 2, 4, 5).reshape(B, H * dim_scale, W * dim_scale, c_out)
    mu = jnp.mean(y, axis=-1, keepdims=True)
    var = jnp.mean((y - mu) ** 2, axis=-1, keepdims=True)
    return (y - mu) / jnp.sqrt(var + EPS) * gamma + beta


if __name__ == "__main__":
    key = jax.random.PRNGKey(0)
    B, H, W, C = 2, 8, 8, 32
    dim_scale = 4

    k1, k2, k3 = jax.random.split(key, 3)
    x = jax.random.normal(k1, (B, H, W, C), dtype=jnp.float32)
    # nn.Linear(C, 4C, bias=False) stores (out, in) in torch; here directly the
    # (in, out) matrix used as x @ W.
    w = jax.random.normal(k2, (C, dim_scale * C), dtype=jnp.float32) * 0.05
    gamma = 1.0 + 0.1 * jax.random.normal(k3, (C // dim_scale,), dtype=jnp.float32)
    beta = jnp.linspace(-0.1, 0.1, C // dim_scale, dtype=jnp.float32)

    out_dtype = jnp.bfloat16   # write-bound kernel: bf16 output by default
    out = final_patch_expand_2d(x, w, gamma, beta, dim_scale=dim_scale,
                                out_dtype=out_dtype)
    out = jax.block_until_ready(out)

    ref = _reference(x, w, gamma, beta, dim_scale=dim_scale)
    assert out.shape == (B, H * dim_scale, W * dim_scale, C // dim_scale)
    assert out.dtype == jnp.dtype(out_dtype)

    # Quantize the f32 reference to the kernel's output dtype so the check isolates
    # kernel math (bf16 matmul inputs, MXU group stats) from the intentional bf16
    # output rounding.
    ref_q = ref.astype(out_dtype).astype(jnp.float32)
    out_f = out.astype(jnp.float32)
    err = float(jnp.max(jnp.abs(out_f - ref_q)))
    assert jnp.allclose(out_f, ref_q, atol=2e-2, rtol=2e-2), f"max abs err {err}"

    print("KERNEL_OK")
</pallas_src>

<mosaic_0001>
module attributes {stable_mosaic.version = 11 : i64} {
  func.func @_expand_norm_shuffle_kernel(%arg0: i32, %arg1: memref<64x32xf32, #tpu.memory_space<vmem>>, %arg2: memref<4x32x32xbf16, #tpu.memory_space<vmem>>, %arg3: memref<32x8xf32, #tpu.memory_space<vmem>>, %arg4: memref<8x32xf32, #tpu.memory_space<vmem>>, %arg5: memref<1x32xf32, #tpu.memory_space<vmem>>, %arg6: memref<1x32xf32, #tpu.memory_space<vmem>>, %arg7: memref<8x4x8x32xbf16, #tpu.memory_space<vmem>>) attributes {dimension_semantics = [#tpu.dimension_semantics<parallel>], iteration_bounds = array<i64: 2>, scalar_prefetch = 0 : i64, scratch_operands = 0 : i64, tpu.core_type = #tpu.core_type<tc>, window_params = [{transform_indices = @transform_0, window_bounds = array<i64: 64, 32>}, {pipeline_mode = #tpu.pipeline_mode<synchronous>, transform_indices = @transform_1, window_bounds = array<i64: 4, 32, 32>}, {pipeline_mode = #tpu.pipeline_mode<synchronous>, transform_indices = @transform_2, window_bounds = array<i64: 32, 8>}, {pipeline_mode = #tpu.pipeline_mode<synchronous>, transform_indices = @transform_3, window_bounds = array<i64: 8, 32>}, {pipeline_mode = #tpu.pipeline_mode<synchronous>, transform_indices = @transform_4, window_bounds = array<i64: 1, 32>}, {pipeline_mode = #tpu.pipeline_mode<synchronous>, transform_indices = @transform_5, window_bounds = array<i64: 1, 32>}, {transform_indices = @transform_6, window_bounds = array<i64: 8, 4, 8, 32>}]} {
    %c0 = arith.constant 0 : index
    %c0_0 = arith.constant 0 : index
    %0 = vector.load %arg1[%c0, %c0_0] : memref<64x32xf32, #tpu.memory_space<vmem>>, vector<64x32xf32>
    %1 = arith.truncf %0 : vector<64x32xf32> to vector<64x32xbf16>
    %c0_1 = arith.constant 0 : index
    %c0_2 = arith.constant 0 : index
    %2 = vector.load %arg3[%c0_1, %c0_2] : memref<32x8xf32, #tpu.memory_space<vmem>>, vector<32x8xf32>
    %c0_3 = arith.constant 0 : index
    %c0_4 = arith.constant 0 : index
    %3 = vector.load %arg4[%c0_3, %c0_4] : memref<8x32xf32, #tpu.memory_space<vmem>>, vector<8x32xf32>
    %c0_5 = arith.constant 0 : index
    %c0_6 = arith.constant 0 : index
    %4 = vector.load %arg5[%c0_5, %c0_6] : memref<1x32xf32, #tpu.memory_space<vmem>>, vector<1x32xf32>
    %c0_7 = arith.constant 0 : index
    %c0_8 = arith.constant 0 : index
    %5 = vector.load %arg6[%c0_7, %c0_8] : memref<1x32xf32, #tpu.memory_space<vmem>>, vector<1x32xf32>
    %c0_9 = arith.constant 0 : index
    %c0_10 = arith.constant 0 : index
    %c0_11 = arith.constant 0 : index
    %6 = vector.load %arg2[%c0_9, %c0_10, %c0_11] : memref<4x32x32xbf16, #tpu.memory_space<vmem>>, vector<1x32x32xbf16>
    %7 = vector.shape_cast %6 : vector<1x32x32xbf16> to vector<32x32xbf16>
    %cst = arith.constant dense<0.000000e+00> : vector<64x32xf32>
    %8 = tpu.matmul %1, %7, %cst {dimension_numbers = #tpu.dot_dimension_numbers<[1], [0], [0], [1], [0, 0, 1, 1], [], []>} : vector<64x32xbf16>, vector<32x32xbf16>, vector<64x32xf32> -> vector<64x32xf32>
    %cst_12 = arith.constant dense<0.000000e+00> : vector<64x8xf32>
    %9 = tpu.matmul %8, %2, %cst_12 {dimension_numbers = #tpu.dot_dimension_numbers<[1], [0], [0], [1], [0, 0, 1, 1], [], []>} : vector<64x32xf32>, vector<32x8xf32>, vector<64x8xf32> -> vector<64x8xf32>
    %cst_13 = arith.constant dense<0.000000e+00> : vector<64x32xf32>
    %10 = tpu.matmul %9, %3, %cst_13 {dimension_numbers = #tpu.dot_dimension_numbers<[1], [0], [0], [1], [0, 0, 1, 1], [], []>} : vector<64x8xf32>, vector<8x32xf32>, vector<64x32xf32> -> vector<64x32xf32>
    %11 = arith.subf %8, %10 : vector<64x32xf32>
    %12 = arith.mulf %11, %11 : vector<64x32xf32>
    %cst_14 = arith.constant dense<0.000000e+00> : vector<64x8xf32>
    %13 = tpu.matmul %12, %2, %cst_14 {dimension_numbers = #tpu.dot_dimension_numbers<[1], [0], [0], [1], [0, 0, 1, 1], [], []>} : vector<64x32xf32>, vector<32x8xf32>, vector<64x8xf32> -> vector<64x8xf32>
    %cst_15 = arith.constant dense<0.000000e+00> : vector<64x32xf32>
    %14 = tpu.matmul %13, %3, %cst_15 {dimension_numbers = #tpu.dot_dimension_numbers<[1], [0], [0], [1], [0, 0, 1, 1], [], []>} : vector<64x8xf32>, vector<8x32xf32>, vector<64x32xf32> -> vector<64x32xf32>
    %cst_16 = arith.constant 9.99999974E-6 : f32
    %15 = vector.broadcast %cst_16 : f32 to vector<64x32xf32>
    %16 = arith.addf %14, %15 : vector<64x32xf32>
    %17 = math.rsqrt %16 : vector<64x32xf32>
    %18 = arith.mulf %11, %17 : vector<64x32xf32>
    %19 = vector.broadcast %4 : vector<1x32xf32> to vector<64x32xf32>
    %20 = arith.mulf %18, %19 : vector<64x32xf32>
    %21 = vector.broadcast %5 : vector<1x32xf32> to vector<64x32xf32>
    %22 = arith.addf %20, %21 : vector<64x32xf32>
    %23 = arith.truncf %22 : vector<64x32xf32> to vector<64x32xbf16>
    %24 = vector.shape_cast %23 : vector<64x32xbf16> to vector<8x8x32xbf16>
    %c0_17 = arith.constant 0 : index
    %c0_18 = arith.constant 0 : index
    %c0_19 = arith.constant 0 : index
    %c0_20 = arith.constant 0 : index
    %25 = vector.load %arg7[%c0_17, %c0_18, %c0_19, %c0_20] : memref<8x4x8x32xbf16, #tpu.memory_space<vmem>>, vector<8x1x8x32xbf16>
    %26 = vector.shape_cast %25 : vector<8x1x8x32xbf16> to vector<8x8x32xbf16>
    %27 = vector.shape_cast %24 : vector<8x8x32xbf16> to vector<8x1x8x32xbf16>
    tpu.vector_store %arg7[%c0_17, %c0_18, %c0_19, %c0_20], %27 {strides = array<i32>} : memref<8x4x8x32xbf16, #tpu.memory_space<vmem>>, vector<8x1x8x32xbf16>,
    %c1 = arith.constant 1 : index
    %c0_21 = arith.constant 0 : index
    %c0_22 = arith.constant 0 : index
    %28 = vector.load %arg2[%c1, %c0_21, %c0_22] : memref<4x32x32xbf16, #tpu.memory_space<vmem>>, vector<1x32x32xbf16>
    %29 = vector.shape_cast %28 : vector<1x32x32xbf16> to vector<32x32xbf16>
    %cst_23 = arith.constant dense<0.000000e+00> : vector<64x32xf32>
    %30 = tpu.matmul %1, %29, %cst_23 {dimension_numbers = #tpu.dot_dimension_numbers<[1], [0], [0], [1], [0, 0, 1, 1], [], []>} : vector<64x32xbf16>, vector<32x32xbf16>, vector<64x32xf32> -> vector<64x32xf32>
    %cst_24 = arith.constant dense<0.000000e+00> : vector<64x8xf32>
    %31 = tpu.matmul %30, %2, %cst_24 {dimension_numbers = #tpu.dot_dimension_numbers<[1], [0], [0], [1], [0, 0, 1, 1], [], []>} : vector<64x32xf32>, vector<32x8xf32>, vector<64x8xf32> -> vector<64x8xf32>
    %cst_25 = arith.constant dense<0.000000e+00> : vector<64x32xf32>
    %32 = tpu.matmul %31, %3, %cst_25 {dimension_numbers = #tpu.dot_dimension_numbers<[1], [0], [0], [1], [0, 0, 1, 1], [], []>} : vector<64x8xf32>, vector<8x32xf32>, vector<64x32xf32> -> vector<64x32xf32>
    %33 = arith.subf %30, %32 : vector<64x32xf32>
    %34 = arith.mulf %33, %33 : vector<64x32xf32>
    %cst_26 = arith.constant dense<0.000000e+00> : vector<64x8xf32>
    %35 = tpu.matmul %34, %2, %cst_26 {dimension_numbers = #tpu.dot_dimension_numbers<[1], [0], [0], [1], [0, 0, 1, 1], [], []>} : vector<64x32xf32>, vector<32x8xf32>, vector<64x8xf32> -> vector<64x8xf32>
    %cst_27 = arith.constant dense<0.000000e+00> : vector<64x32xf32>
    %36 = tpu.matmul %35, %3, %cst_27 {dimension_numbers = #tpu.dot_dimension_numbers<[1], [0], [0], [1], [0, 0, 1, 1], [], []>} : vector<64x8xf32>, vector<8x32xf32>, vector<64x32xf32> -> vector<64x32xf32>
    %cst_28 = arith.constant 9.99999974E-6 : f32
    %37 = vector.broadcast %cst_28 : f32 to vector<64x32xf32>
    %38 = arith.addf %36, %37 : vector<64x32xf32>
    %39 = math.rsqrt %38 : vector<64x32xf32>
    %40 = arith.mulf %33, %39 : vector<64x32xf32>
    %41 = vector.broadcast %4 : vector<1x32xf32> to vector<64x32xf32>
    %42 = arith.mulf %40, %41 : vector<64x32xf32>
    %43 = vector.broadcast %5 : vector<1x32xf32> to vector<64x32xf32>
    %44 = arith.addf %42, %43 : vector<64x32xf32>
    %45 = arith.truncf %44 : vector<64x32xf32> to vector<64x32xbf16>
    %46 = vector.shape_cast %45 : vector<64x32xbf16> to vector<8x8x32xbf16>
    %c0_29 = arith.constant 0 : index
    %c1_30 = arith.constant 1 : index
    %c0_31 = arith.constant 0 : index
    %c0_32 = arith.constant 0 : index
    %47 = vector.load %arg7[%c0_29, %c1_30, %c0_31, %c0_32] : memref<8x4x8x32xbf16, #tpu.memory_space<vmem>>, vector<8x1x8x32xbf16>
    %48 = vector.shape_cast %47 : vector<8x1x8x32xbf16> to vector<8x8x32xbf16>
    %49 = vector.shape_cast %46 : vector<8x8x32xbf16> to vector<8x1x8x32xbf16>
    tpu.vector_store %arg7[%c0_29, %c1_30, %c0_31, %c0_32], %49 {strides = array<i32>} : memref<8x4x8x32xbf16, #tpu.memory_space<vmem>>, vector<8x1x8x32xbf16>,
    %c2 = arith.constant 2 : index
    %c0_33 = arith.constant 0 : index
    %c0_34 = arith.constant 0 : index
    %50 = vector.load %arg2[%c2, %c0_33, %c0_34] : memref<4x32x32xbf16, #tpu.memory_space<vmem>>, vector<1x32x32xbf16>
    %51 = vector.shape_cast %50 : vector<1x32x32xbf16> to vector<32x32xbf16>
    %cst_35 = arith.constant dense<0.000000e+00> : vector<64x32xf32>
    %52 = tpu.matmul %1, %51, %cst_35 {dimension_numbers = #tpu.dot_dimension_numbers<[1], [0], [0], [1], [0, 0, 1, 1], [], []>} : vector<64x32xbf16>, vector<32x32xbf16>, vector<64x32xf32> -> vector<64x32xf32>
    %cst_36 = arith.constant dense<0.000000e+00> : vector<64x8xf32>
    %53 = tpu.matmul %52, %2, %cst_36 {dimension_numbers = #tpu.dot_dimension_numbers<[1], [0], [0], [1], [0, 0, 1, 1], [], []>} : vector<64x32xf32>, vector<32x8xf32>, vector<64x8xf32> -> vector<64x8xf32>
    %cst_37 = arith.constant dense<0.000000e+00> : vector<64x32xf32>
    %54 = tpu.matmul %53, %3, %cst_37 {dimension_numbers = #tpu.dot_dimension_numbers<[1], [0], [0], [1], [0, 0, 1, 1], [], []>} : vector<64x8xf32>, vector<8x32xf32>, vector<64x32xf32> -> vector<64x32xf32>
    %55 = arith.subf %52, %54 : vector<64x32xf32>
    %56 = arith.mulf %55, %55 : vector<64x32xf32>
    %cst_38 = arith.constant dense<0.000000e+00> : vector<64x8xf32>
    %57 = tpu.matmul %56, %2, %cst_38 {dimension_numbers = #tpu.dot_dimension_numbers<[1], [0], [0], [1], [0, 0, 1, 1], [], []>} : vector<64x32xf32>, vector<32x8xf32>, vector<64x8xf32> -> vector<64x8xf32>
    %cst_39 = arith.constant dense<0.000000e+00> : vector<64x32xf32>
    %58 = tpu.matmul %57, %3, %cst_39 {dimension_numbers = #tpu.dot_dimension_numbers<[1], [0], [0], [1], [0, 0, 1, 1], [], []>} : vector<64x8xf32>, vector<8x32xf32>, vector<64x32xf32> -> vector<64x32xf32>
    %cst_40 = arith.constant 9.99999974E-6 : f32
    %59 = vector.broadcast %cst_40 : f32 to vector<64x32xf32>
    %60 = arith.addf %58, %59 : vector<64x32xf32>
    %61 = math.rsqrt %60 : vector<64x32xf32>
    %62 = arith.mulf %55, %61 : vector<64x32xf32>
    %63 = vector.broadcast %4 : vector<1x32xf32> to vector<64x32xf32>
    %64 = arith.mulf %62, %63 : vector<64x32xf32>
    %65 = vector.broadcast %5 : vector<1x32xf32> to vector<64x32xf32>
    %66 = arith.addf %64, %65 : vector<64x32xf32>
    %67 = arith.truncf %66 : vector<64x32xf32> to vector<64x32xbf16>
    %68 = vector.shape_cast %67 : vector<64x32xbf16> to vector<8x8x32xbf16>
    %c0_41 = arith.constant 0 : index
    %c2_42 = arith.constant 2 : index
    %c0_43 = arith.constant 0 : index
    %c0_44 = arith.constant 0 : index
    %69 = vector.load %arg7[%c0_41, %c2_42, %c0_43, %c0_44] : memref<8x4x8x32xbf16, #tpu.memory_space<vmem>>, vector<8x1x8x32xbf16>
    %70 = vector.shape_cast %69 : vector<8x1x8x32xbf16> to vector<8x8x32xbf16>
    %71 = vector.shape_cast %68 : vector<8x8x32xbf16> to vector<8x1x8x32xbf16>
    tpu.vector_store %arg7[%c0_41, %c2_42, %c0_43, %c0_44], %71 {strides = array<i32>} : memref<8x4x8x32xbf16, #tpu.memory_space<vmem>>, vector<8x1x8x32xbf16>,
    %c3 = arith.constant 3 : index
    %c0_45 = arith.constant 0 : index
    %c0_46 = arith.constant 0 : index
    %72 = vector.load %arg2[%c3, %c0_45, %c0_46] : memref<4x32x32xbf16, #tpu.memory_space<vmem>>, vector<1x32x32xbf16>
    %73 = vector.shape_cast %72 : vector<1x32x32xbf16> to vector<32x32xbf16>
    %cst_47 = arith.constant dense<0.000000e+00> : vector<64x32xf32>
    %74 = tpu.matmul %1, %73, %cst_47 {dimension_numbers = #tpu.dot_dimension_numbers<[1], [0], [0], [1], [0, 0, 1, 1], [], []>} : vector<64x32xbf16>, vector<32x32xbf16>, vector<64x32xf32> -> vector<64x32xf32>
    %cst_48 = arith.constant dense<0.000000e+00> : vector<64x8xf32>
    %75 = tpu.matmul %74, %2, %cst_48 {dimension_numbers = #tpu.dot_dimension_numbers<[1], [0], [0], [1], [0, 0, 1, 1], [], []>} : vector<64x32xf32>, vector<32x8xf32>, vector<64x8xf32> -> vector<64x8xf32>
    %cst_49 = arith.constant dense<0.000000e+00> : vector<64x32xf32>
    %76 = tpu.matmul %75, %3, %cst_49 {dimension_numbers = #tpu.dot_dimension_numbers<[1], [0], [0], [1], [0, 0, 1, 1], [], []>} : vector<64x8xf32>, vector<8x32xf32>, vector<64x32xf32> -> vector<64x32xf32>
    %77 = arith.subf %74, %76 : vector<64x32xf32>
    %78 = arith.mulf %77, %77 : vector<64x32xf32>
    %cst_50 = arith.constant dense<0.000000e+00> : vector<64x8xf32>
    %79 = tpu.matmul %78, %2, %cst_50 {dimension_numbers = #tpu.dot_dimension_numbers<[1], [0], [0], [1], [0, 0, 1, 1], [], []>} : vector<64x32xf32>, vector<32x8xf32>, vector<64x8xf32> -> vector<64x8xf32>
    %cst_51 = arith.constant dense<0.000000e+00> : vector<64x32xf32>
    %80 = tpu.matmul %79, %3, %cst_51 {dimension_numbers = #tpu.dot_dimension_numbers<[1], [0], [0], [1], [0, 0, 1, 1], [], []>} : vector<64x8xf32>, vector<8x32xf32>, vector<64x32xf32> -> vector<64x32xf32>
    %cst_52 = arith.constant 9.99999974E-6 : f32
    %81 = vector.broadcast %cst_52 : f32 to vector<64x32xf32>
    %82 = arith.addf %80, %81 : vector<64x32xf32>
    %83 = math.rsqrt %82 : vector<64x32xf32>
    %84 = arith.mulf %77, %83 : vector<64x32xf32>
    %85 = vector.broadcast %4 : vector<1x32xf32> to vector<64x32xf32>
    %86 = arith.mulf %84, %85 : vector<64x32xf32>
    %87 = vector.broadcast %5 : vector<1x32xf32> to vector<64x32xf32>
    %88 = arith.addf %86, %87 : vector<64x32xf32>
    %89 = arith.truncf %88 : vector<64x32xf32> to vector<64x32xbf16>
    %90 = vector.shape_cast %89 : vector<64x32xbf16> to vector<8x8x32xbf16>
    %c0_53 = arith.constant 0 : index
    %c3_54 = arith.constant 3 : index
    %c0_55 = arith.constant 0 : index
    %c0_56 = arith.constant 0 : index
    %91 = vector.load %arg7[%c0_53, %c3_54, %c0_55, %c0_56] : memref<8x4x8x32xbf16, #tpu.memory_space<vmem>>, vector<8x1x8x32xbf16>
    %92 = vector.shape_cast %91 : vector<8x1x8x32xbf16> to vector<8x8x32xbf16>
    %93 = vector.shape_cast %90 : vector<8x8x32xbf16> to vector<8x1x8x32xbf16>
    tpu.vector_store %arg7[%c0_53, %c3_54, %c0_55, %c0_56], %93 {strides = array<i32>} : memref<8x4x8x32xbf16, #tpu.memory_space<vmem>>, vector<8x1x8x32xbf16>,
    return
  }
  func.func @transform_0(%arg0: i32) -> (i32, i32) {
    %c0_i32 = arith.constant 0 : i32
    %c0_i32_0 = arith.constant 0 : i32
    return %arg0, %c0_i32 : i32, i32
  }
  func.func @transform_1(%arg0: i32) -> (i32, i32, i32) {
    %c0_i32 = arith.constant 0 : i32
    %c0_i32_0 = arith.constant 0 : i32
    %c0_i32_1 = arith.constant 0 : i32
    %c0_i32_2 = arith.constant 0 : i32
    return %c0_i32, %c0_i32_0, %c0_i32_1 : i32, i32, i32
  }
  func.func @transform_2(%arg0: i32) -> (i32, i32) {
    %c0_i32 = arith.constant 0 : i32
    %c0_i32_0 = arith.constant 0 : i32
    %c0_i32_1 = arith.constant 0 : i32
    return %c0_i32, %c0_i32_0 : i32, i32
  }
  func.func @transform_3(%arg0: i32) -> (i32, i32) {
    %c0_i32 = arith.constant 0 : i32
    %c0_i32_0 = arith.constant 0 : i32
    %c0_i32_1 = arith.constant 0 : i32
    return %c0_i32, %c0_i32_0 : i32, i32
  }
  func.func @transform_4(%arg0: i32) -> (i32, i32) {
    %c0_i32 = arith.constant 0 : i32
    %c0_i32_0 = arith.constant 0 : i32
    %c0_i32_1 = arith.constant 0 : i32
    return %c0_i32, %c0_i32_0 : i32, i32
  }
  func.func @transform_5(%arg0: i32) -> (i32, i32) {
    %c0_i32 = arith.constant 0 : i32
    %c0_i32_0 = arith.constant 0 : i32
    %c0_i32_1 = arith.constant 0 : i32
    return %c0_i32, %c0_i32_0 : i32, i32
  }
  func.func @transform_6(%arg0: i32) -> (i32, i32, i32, i32) {
    %c0_i32 = arith.constant 0 : i32
    %c0_i32_0 = arith.constant 0 : i32
    %c0_i32_1 = arith.constant 0 : i32
    %c0_i32_2 = arith.constant 0 : i32
    return %arg0, %c0_i32, %c0_i32_0, %c0_i32_1 : i32, i32, i32, i32
  }
}

</mosaic_0001>

<bundles_post_ra>
// kernel: tpu_custom_call.1
= control target key start
LH: loop header
LB: loop body
LE: loop exit
PB: predicated region body
PF: predicated region fallthrough
CT: control target
= control target key end

     0   :  { %11 = vsyncpa [#allocation3], 0  ;;  %s4950_s0 = inlined_call_operand.vmem [shape: f32[128,32], index: 0, kind: input, shape index: {}]   ;;  %s4951_s1 = inlined_call_operand.vmem [shape: bf16[4,32,32], index: 1, kind: input, shape index: {}]   ;;  %s4952_s2 = inlined_call_operand.vmem [shape: f32[32,8], index: 2, kind: input, shape index: {}]   ;;  %s4953_s3 = inlined_call_operand.vmem [shape: f32[8,32], index: 3, kind: input, shape index: {}]   ;;  %s4954_s4 = inlined_call_operand.vmem [shape: f32[1,32], index: 4, kind: input, shape index: {}]   ;;  %s4955_s5 = inlined_call_operand.vmem [shape: f32[1,32], index: 5, kind: input, shape index: {}]   ;;  %s4956_s6 = inlined_call_operand.hbm [shape: bf16[16,4,8,32], index: 6, kind: output, shape index: {}]  }
   0x1   :  { %13 = vsyncpa [#allocation3 + $0x1], 0  ;;  %s4186_s21 = smov 0   ;;  %s4188_s22 = smov 0  }
   0x2   :  { %s4190_s23 = smov 0   ;;  %s4192_s24 = smov 0  }
   0x3 LB: > { %s4207_s25 = sadd.s32 4294967295, %s4146_s24   ;;  %s3123_s26 = sadd.s32 4294967294, %s4146_s24   ;;  %s4146_s24 = sphi %s4192_s24, %s4962_s24   ;;  %s4142_s23 = sphi %s4190_s23, %s4961_s23   ;;  %s4138_s22 = sphi %s4188_s22, %s4960_s22   ;;  %s4134_s21 = sphi %s4186_s21, %s4959_s21  }
   0x4   : > { %s4211_s27 = sadd.s32 1, %s4146_s24   ;;  %s157_s28 = sadd.s32 1, %s4142_s23 }
   0x5   : > { %s154_s29 = ssub.s32 %s4146_s24, %s4211_s27  ;;  %p167_p0 = scmp.ne.s32.totalorder %s4142_s23, %s4138_s22 }
   0x6   : > { %p155_p1 = scmp.eq.s32.totalorder %s154_s29, 0  ;;  %p168_p2 = scmp.eq.s32.totalorder %s4207_s25, 1 }
   0x7   : > { %p173_p3 = scmp.ne.s32.totalorder %s4138_s22, %s4134_s21  ;;  %p174_p4 = scmp.eq.s32.totalorder %s3123_s26, 1 }
   0x8   : > { %s4222_s30 = scalar_select %p155_p1, %s4142_s23, %s157_s28  }
   0x9   : > { %p4224_p5 = por %p168_p2, %p167_p0  ;;  %p4228_p6 = por %p174_p4, %p173_p3 }
   0xa   : > { %p3126_p7 = scmp.ge.s32.totalorder %s4146_s24, 1  ;;  %p216_p8 = scmp.lt.s32.totalorder %s4146_s24, 3 }
   0xc   : > { %p217_p9 = pnand %p3126_p7, %p216_p8 }
   0xd   : > { %v4009_v0 = vld [vmem:[%s4951_s1] sm:$0xff] (!%p217_p9)   ;;  %s3128_s11 = sshll.u32 (!%p217_p9), %s4207_s25, 3  ;;  %v4010_v1 = vld [vmem:[%s4951_s1 + $0x8] sm:$0xff] (!%p217_p9)   ;;  %vm289_vm0 = vcmask (!%p217_p9), 261120   ;;  %v268_v17 = vld [vmem:[%s4952_s2 + $0x10] sm:$0xff] (!%p217_p9)  ;;  %vm496_vm1 = vcmask (!%p217_p9), 64512  }
   0xe   : > { %220 = sbr.rel (%p217_p9) target bundleno = 3139 (0xc43), region = 44  ;;  %p247_p10 = scmp.lt.s32.totalorder (!%p217_p9), %s3128_s11, 15  ;;  %3584 = vmatprep.subr.bf16.mxu0 (!%p217_p9), %v4009_v0  ;;  %v266_v2 = vld [vmem:[%s4952_s2] sm:$0xff] (!%p217_p9)  ;;  %v267_v3 = vld [vmem:[%s4952_s2 + $0x8] sm:$0xff] (!%p217_p9)  ;;  %v269_v18 = vld [vmem:[%s4952_s2 + $0x18] sm:$0xff] (!%p217_p9)  ;;  %vm976_vm2 = vcmask (!%p217_p9), 257024  }
   0xf   : > { %3585 = vmatpush3.bf16.msra.mxu0 (!%p217_p9), %v4009_v0  ;;  %v4247_v4 = vpack.c.bf16 (!%p217_p9), %v267_v3, %v266_v2  ;;  %v4276_v19 = vpack.c.bf16 (!%p217_p9), %v269_v18, %v268_v17  ;;  %v4284_v20 = vld [vmem:[%s4953_s3] sm:$0xff] (!%p217_p9)  ;;  %v4011_v37 = vld [vmem:[%s4951_s1 + $0x10] sm:$0xff] (!%p217_p9)   ;;  %v4012_v47 = vld [vmem:[%s4951_s1 + $0x18] sm:$0xff] (!%p217_p9)   ;;  %s243_s17 = sand.u32 (!%p217_p9), 1, %s4138_s22   ;;  %s3391_s10 = sshll.u32 (!%p217_p9), %s4207_s25, 11 }
  0x10   : > { %3586 = vmatprep.subr.bf16.mxu0 (!%p217_p9), %v4010_v1  ;;  %s3127_s28 = sshll.u32 (!%p217_p9), %s243_s17, 7  ;;  %s4899_s14 = scalar_lea.hbm (!%p217_p9), %s4956_s6, %s3391_s10 }
  0x11   : > { %3905 = vmatprep.subr.bf16.mxu1 (!%p217_p9), %v4247_v4  ;;  %s4440_s29 = scalar_lea.vmem (!%p217_p9), [#allocation2], %s3127_s28  ;;  %s4909_s25 = scalar_lea.sflag (!%p217_p9), [#allocation3], %s243_s17 }
  0x12   : > { %3907 = vmatpush3.bf16.msra.mxu1 (!%p217_p9), %v4247_v4  ;;  %s4148_s16 = smov (!%p217_p9), [#allocation2]  }
  0x13   : > { %3587 = vmatpush3.bf16.msra.mxu0 (!%p217_p9), %v4010_v1  ;;  %3909 = vmatprep.subr.bf16.mxu1 (!%p217_p9), %v4276_v19 }
  0x14   : > { %3616 = vmatprep.subr.mxu0 (!%p217_p9), %v4284_v20 }
  0x15   : > { %s4964_s11 = smov (!%p247_p10, %s3128_s11), 15 }
  0x16   : > { %s3129_s18 = sshll.u32 %s4964_s11, 3  ;;  %3911 = vmatpush3.bf16.msra.mxu1 %v4276_v19  ;;  %s3061_s11 = sshll.u32 %s4440_s29, 4  ;;  %s4901_s11 = int_to_ptr.vmem [resolvable:$true] %s3061_s11 }
  0x17   : > { %s250_s26 = scalar_lea.vmem %s4950_s0, %s3129_s18  ;;  %3913 = vmatprep.subr.bf16.mxu1 %v4247_v4  ;;  %s4084_s15 = scalar_lea.vmem %s4901_s11, 2048 }
  0x18   : > { %v254_v5 = vld [vmem:[%s250_s26] sm:$0xff]  ;;  %v255_v6 = vld [vmem:[%s250_s26 + $0x8] sm:$0xff]  ;;  %v256_v7 = vld [vmem:[%s250_s26 + $0x10] sm:$0xff]  ;;  %p4085_p11 = scmp.ne.s32.totalorder %s4901_s11, %s4084_s15  ;;  %s4088_s18 = sshll.u32 %s4148_s16, 4  ;;  %s4089_s18 = int_to_ptr.vmem [resolvable:$false] %s4088_s18 }
  0x19   : > { %v4254_v8 = vpack.c.bf16 %v255_v6, %v254_v5  ;;  %v257_v9 = vld [vmem:[%s250_s26 + $0x18] sm:$0xff]  ;;  %v258_v10 = vld [vmem:[%s250_s26 + $0x20] sm:$0xff]  ;;  %v259_v11 = vld [vmem:[%s250_s26 + $0x28] sm:$0xff]  ;;  %s4090_s19 = scalar_lea.vmem %s4089_s18, 4096  ;;  %p4091_p0 = scmp.lt.s32.totalorder %s4901_s11, %s4089_s18 }
  0x1a   : > { %v4256_v12 = vpack.c.bf16 %v257_v9, %v256_v7  ;;  %v4258_v13 = vpack.c.bf16 %v259_v11, %v258_v10  ;;  %v260_v14 = vld [vmem:[%s250_s26 + $0x30] sm:$0xff]  ;;  %v261_v15 = vld [vmem:[%s250_s26 + $0x38] sm:$0xff]  ;;  %p4086_p12 = pnand %p4085_p11, %p4224_p5  ;;  %p4092_p1 = scmp.lt.s32.totalorder %s4090_s19, %s4084_s15 }
  0x1b   : > { %3588 = vmatprep.mubr.msk.bf16.mxu0 %vm289_vm0, %v4254_v8  ;;  %v4266_v16 = vpack.c.bf16 %v261_v15, %v260_v14 }
  0x1c   : > { %3589 = vmatmul.mubr.msk.bf16.vlgmr.msra.gmra.mrb[0].mxu0 %vm289_vm0, %v4256_v12  ;;  %p4087_p13 = pneg %p4086_p12  ;;  %p4093_p2 = por %p4092_p1, %p4091_p0 }
  0x1d   : > { %3592 = vmatprep.mubr.msk.bf16.mxu0 %vm289_vm0, %v4258_v13  ;;  %3617 = vmatpush3.msra.mxu0 %v4284_v20 }
  0x1e   : > { %3650 = vmatprep.subr.mxu0 %v4284_v20  ;;  %p4094_p3 = pnand %p4093_p2, %p4087_p13 }
  0x24   : > { %3593 = vmatmul.mubr.msk.bf16.gmra.mrb[4].mxu0 %vm289_vm0, %v4266_v16 }
  0xef   : > { %v3590_v21 = vpop.f32.mrb[0].mxu0 }
  0xf0   : > { %v336_v22 = vpop.f32.mrb[1].mxu0 }
  0xf1   : > { %v3591_v23 = vpop.f32.mrb[2].mxu0  ;;  %3604 = vmatprep.mubr.msk.f32.mxu1 %vm289_vm0, %v336_v22 }
  0xf2   : > { %v339_v24 = vpop.f32.mrb[3].mxu0 }
  0xf3   : > { %3605 = vmatmul.mubr.msk.f32.vlgmr.msra.gmra.mrb[0].mxu1 %vm289_vm0, %v339_v24 }
  0xf4   : > { %3607 = vmatprep.mubr.msk.f32.mxu1 %vm289_vm0, %v3590_v21  ;;  %3915 = vmatpush3.bf16.msra.mxu1 %v4247_v4 }
  0xf5   : > { %3917 = vmatprep.subr.bf16.mxu1 %v4276_v19 }
  0xf7   : > { %v3594_v25 = vpop.f32.mrb[4].mxu0  ;;  %3608 = vmatmul.mubr.msk.f32.gmra.mrb[2].mxu1 %vm289_vm0, %v3591_v23 }
  0xf8   : > { %v352_v26 = vpop.f32.mrb[5].mxu0  ;;  %3919 = vmatpush3.bf16.msra.mxu1 %v4276_v19 }
  0xf9   : > { %v3595_v27 = vpop.f32.mrb[6].mxu0  ;;  %3610 = vmatprep.mubr.msk.f32.mxu1 %vm289_vm0, %v352_v26  ;;  %3664 = vmatprep.subr.bf16.mxu1 %v4011_v37 }
  0xfa   : > { %v355_v28 = vpop.f32.mrb[7].mxu0 }
  0xfb   : > { %3611 = vmatmul.mubr.msk.f32.gmra.mrb[4].mxu1 %vm289_vm0, %v355_v28 }
  0xfc   : > { %3613 = vmatprep.mubr.msk.f32.mxu1 %vm289_vm0, %v3594_v25 }
  0xff   : > { %3614 = vmatmul.mubr.msk.f32.gmra.mrb[6].mxu1 %vm289_vm0, %v3595_v27 }
 0x1c6   : > { %v3606_v29 = vpop.f32.mrb[0].mxu1 }
 0x1c7   : > { %v457_v30 = vpop.f32.mrb[1].mxu1 }
 0x1c8   : > { %3618 = vmatprep.mubr.msk.f32.mxu0 %vm496_vm1, %v457_v30 }
 0x1c9   : > { %3619 = vmatmul.mubr.msk.f32.vlgmr.msra.gmra.mrb[8].mxu0 %vm496_vm1, %v3606_v29 }
 0x1ca   : > { %v3609_v31 = vpop.f32.mrb[2].mxu1  ;;  %3651 = vmatpush3.msra.mxu0 %v4284_v20 }
 0x1cb   : > { %v467_v32 = vpop.f32.mrb[3].mxu1  ;;  %3921 = vmatprep.subr.bf16.mxu0 %v4247_v4 }
 0x1cc   : > { %3621 = vmatprep.mubr.msk.f32.mxu0 %vm496_vm1, %v467_v32 }
 0x1cd   : > { %3622 = vmatmul.mubr.msk.f32.gmra.mrb[10].mxu0 %vm496_vm1, %v3609_v31 }
 0x1ce   : > { %v3612_v33 = vpop.f32.mrb[4].mxu1 }
 0x1cf   : > { %v477_v34 = vpop.f32.mrb[5].mxu1 }
 0x1d0   : > { %3624 = vmatprep.mubr.msk.f32.mxu0 %vm496_vm1, %v477_v34 }
 0x1d1   : > { %3625 = vmatmul.mubr.msk.f32.gmra.mrb[12].mxu0 %vm496_vm1, %v3612_v33 }
 0x1d2   : > { %v3615_v35 = vpop.f32.mrb[6].mxu1 }
 0x1d3   : > { %v487_v36 = vpop.f32.mrb[7].mxu1 }
 0x1d4   : > { %3627 = vmatprep.mubr.msk.f32.mxu0 %vm496_vm1, %v487_v36  ;;  %v4418_v36 = vld [vmem:[%s4954_s4] ss:$0 sm:$0xff] }
 0x1d5   : > { %3628 = vmatmul.mubr.msk.f32.gmra.mrb[14].mxu0 %vm496_vm1, %v3615_v35 }
 0x29c   : > { %v3620_v38 = vpop.f32.mrb[8].mxu0 }
 0x29d   : > { %v4313_v39 = vsub.f32 %v339_v24, %v3620_v38  ;;  %v587_v40 = vpop.f32.mrb[9].mxu0 }
 0x29e   : > { %v4315_v41 = vsub.f32 %v336_v22, %v587_v40 }
 0x29f   : > { %v635_v44 = vmul.f32 %v4313_v39, %v4313_v39 }
 0x2a0   : > { %v634_v42 = vmul.f32 %v4315_v41, %v4315_v41  ;;  %v3623_v43 = vpop.f32.mrb[10].mxu0 }
 0x2a1   : > { %v4321_v45 = vsub.f32 %v3591_v23, %v3623_v43  ;;  %v597_v46 = vpop.f32.mrb[11].mxu0 }
 0x2a2   : > { %v4326_v48 = vsub.f32 %v3590_v21, %v597_v46  ;;  %3638 = vmatprep.mubr.msk.f32.mxu1 %vm289_vm0, %v634_v42 }
 0x2a3   : > { %3639 = vmatmul.mubr.msk.f32.vlgmr.msra.gmra.mrb[8].mxu1 %vm289_vm0, %v635_v44  ;;  %v637_v51 = vmul.f32 %v4321_v45, %v4321_v45  ;;  %v4424_v44 = vld [vmem:[%s4955_s5] ss:$0 sm:$0xff] }
 0x2a4   : > { %v636_v49 = vmul.f32 %v4326_v48, %v4326_v48  ;;  %3665 = vmatpush3.bf16.msra.mxu1 %v4011_v37  ;;  %v3626_v50 = vpop.f32.mrb[12].mxu0 }
 0x2a5   : > { %v4334_v52 = vsub.f32 %v355_v28, %v3626_v50  ;;  %v607_v53 = vpop.f32.mrb[13].mxu0  ;;  %3666 = vmatprep.subr.bf16.mxu1 %v4012_v47 }
 0x2a6   : > { %v4336_v54 = vsub.f32 %v352_v26, %v607_v53  ;;  %3641 = vmatprep.mubr.msk.f32.mxu1 %vm289_vm0, %v636_v49 }
 0x2a7   : > { %3642 = vmatmul.mubr.msk.f32.gmra.mrb[10].mxu1 %vm289_vm0, %v637_v51  ;;  %v639_v57 = vmul.f32 %v4334_v52, %v4334_v52 }
 0x2a8   : > { %v638_v55 = vmul.f32 %v4336_v54, %v4336_v54  ;;  %v3629_v56 = vpop.f32.mrb[14].mxu0  ;;  %3667 = vmatpush3.bf16.msra.mxu1 %v4012_v47 }
 0x2a9   : > { %v4344_v58 = vsub.f32 %v3595_v27, %v3629_v56  ;;  %v617_v59 = vpop.f32.mrb[15].mxu0  ;;  %3696 = vmatprep.subr.mxu1 %v4284_v20 }
 0x2aa   : > { %v4347_v60 = vsub.f32 %v3594_v25, %v617_v59  ;;  %3644 = vmatprep.mubr.msk.f32.mxu1 %vm289_vm0, %v638_v55 }
 0x2ab   : > { %3645 = vmatmul.mubr.msk.f32.gmra.mrb[12].mxu1 %vm289_vm0, %v639_v57  ;;  %v641_v62 = vmul.f32 %v4344_v58, %v4344_v58 }
 0x2ac   : > { %v640_v61 = vmul.f32 %v4347_v60, %v4347_v60 }
 0x2ae   : > { %3647 = vmatprep.mubr.msk.f32.mxu1 %vm289_vm0, %v640_v61 }
 0x2af   : > { %3648 = vmatmul.mubr.msk.f32.gmra.mrb[14].mxu1 %vm289_vm0, %v641_v62 }
 0x2b0   : > { %3668 = vmatprep.mubr.msk.bf16.mxu1 %vm289_vm0, %v4254_v8 }
 0x2b3   : > { %3669 = vmatmul.mubr.msk.bf16.vlgmr.msra.gmra.mrb[16].mxu1 %vm289_vm0, %v4256_v12 }
 0x2b4   : > { %3672 = vmatprep.mubr.msk.bf16.mxu1 %vm289_vm0, %v4258_v13  ;;  %3697 = vmatpush3.msra.mxu1 %v4284_v20 }
 0x2b5   : > { %3730 = vmatprep.subr.mxu1 %v4284_v20 }
 0x2bb   : > { %3673 = vmatmul.mubr.msk.bf16.gmra.mrb[20].mxu1 %vm289_vm0, %v4266_v16 }
 0x376   : > { %v3640_v63 = vpop.f32.mrb[8].mxu1 }
 0x377   : > { %v732_v0 = vpop.f32.mrb[9].mxu1 }
 0x378   : > { %3652 = vmatprep.mubr.msk.f32.mxu0 %vm496_vm1, %v732_v0 }
 0x379   : > { %3653 = vmatmul.mubr.msk.f32.vlgmr.msra.gmra.mrb[16].mxu0 %vm496_vm1, %v3640_v63 }
 0x37a   : > { %v3643_v1 = vpop.f32.mrb[10].mxu1  ;;  %3923 = vmatpush3.bf16.msra.mxu0 %v4247_v4 }
 0x37b   : > { %v742_v2 = vpop.f32.mrb[11].mxu1  ;;  %3925 = vmatprep.subr.bf16.mxu0 %v4276_v19 }
 0x37c   : > { %3655 = vmatprep.mubr.msk.f32.mxu0 %vm496_vm1, %v742_v2 }
 0x37d   : > { %3656 = vmatmul.mubr.msk.f32.gmra.mrb[18].mxu0 %vm496_vm1, %v3643_v1 }
 0x37e   : > { %v3646_v3 = vpop.f32.mrb[12].mxu1  ;;  %3927 = vmatpush3.bf16.msra.mxu0 %v4276_v19 }
 0x37f   : > { %v752_v5 = vpop.f32.mrb[13].mxu1  ;;  %3929 = vmatprep.subr.bf16.mxu0 %v4247_v4 }
 0x380   : > { %3658 = vmatprep.mubr.msk.f32.mxu0 %vm496_vm1, %v752_v5 }
 0x381   : > { %3659 = vmatmul.mubr.msk.f32.gmra.mrb[20].mxu0 %vm496_vm1, %v3646_v3 }
 0x382   : > { %v3649_v6 = vpop.f32.mrb[14].mxu1 }
 0x383   : > { %v762_v7 = vpop.f32.mrb[15].mxu1 }
 0x384   : > { %3661 = vmatprep.mubr.msk.f32.mxu0 %vm496_vm1, %v762_v7 }
 0x385   : > { %3662 = vmatmul.mubr.msk.f32.gmra.mrb[22].mxu0 %vm496_vm1, %v3649_v6 }
 0x386   : > { %v4379_v9 = vpop.f32.mrb[16].mxu1 }
 0x387   : > { %v4381_v10 = vpop.f32.mrb[17].mxu1 }
 0x388   : > { %v4383_v11 = vpop.f32.mrb[18].mxu1  ;;  %3684 = vmatprep.mubr.msk.f32.mxu0 %vm289_vm0, %v4381_v10 }
 0x389   : > { %v4387_v14 = vpop.f32.mrb[19].mxu1 }
 0x38a   : > { %3685 = vmatmul.mubr.msk.f32.vlgmr.msra.gmra.mrb[24].mxu0 %vm289_vm0, %v4387_v14 }
 0x38b   : > { %3687 = vmatprep.mubr.msk.f32.mxu0 %vm289_vm0, %v4379_v9  ;;  %3931 = vmatpush3.bf16.msra.mxu0 %v4247_v4 }
 0x38c   : > { %3933 = vmatprep.subr.bf16.mxu0 %v4276_v19 }
 0x38e   : > { %v4395_v15 = vpop.f32.mrb[20].mxu1  ;;  %3688 = vmatmul.mubr.msk.f32.gmra.mrb[26].mxu0 %vm289_vm0, %v4383_v11 }
 0x38f   : > { %v4399_v17 = vpop.f32.mrb[21].mxu1  ;;  %3935 = vmatpush3.bf16.msra.mxu0 %v4276_v19 }
 0x390   : > { %v4402_v18 = vpop.f32.mrb[22].mxu1  ;;  %3690 = vmatprep.mubr.msk.f32.mxu0 %vm289_vm0, %v4399_v17 }
 0x391   : > { %v4406_v21 = vpop.f32.mrb[23].mxu1 }
 0x392   : > { %3691 = vmatmul.mubr.msk.f32.gmra.mrb[28].mxu0 %vm289_vm0, %v4406_v21 }
 0x393   : > { %3693 = vmatprep.mubr.msk.f32.mxu0 %vm289_vm0, %v4395_v15 }
 0x396   : > { %3694 = vmatmul.mubr.msk.f32.gmra.mrb[30].mxu0 %vm289_vm0, %v4402_v18 }
 0x44c   : > { %v3654_v22 = vpop.f32.mrb[16].mxu0 }
 0x44d   : > { %v867_v23 = vadd.f32 1e-05, %v3654_v22  ;;  %v861_v24 = vpop.f32.mrb[17].mxu0 }
 0x44e   : > { %v862_v25 = vadd.f32 1e-05, %v861_v24 }
 0x44f   : > { %4017 = vrsqrt.f32 %v867_v23 }
 0x450   : > { %4019 = vrsqrt.f32 %v862_v25  ;;  %v3657_v26 = vpop.f32.mrb[18].mxu0 }
 0x451   : > { %v877_v27 = vadd.f32 1e-05, %v3657_v26  ;;  %v871_v28 = vpop.f32.mrb[19].mxu0 }
 0x452   : > { %v872_v29 = vadd.f32 1e-05, %v871_v28 }
 0x453   : > { %4021 = vrsqrt.f32 %v877_v27 }
 0x454   : > { %4023 = vrsqrt.f32 %v872_v29  ;;  %v3660_v30 = vpop.f32.mrb[20].mxu0 }
 0x455   : > { %v887_v31 = vadd.f32 1e-05, %v3660_v30  ;;  %v881_v32 = vpop.f32.mrb[21].mxu0 }
 0x456   : > { %v882_v33 = vadd.f32 1e-05, %v881_v32 }
 0x457   : > { %4025 = vrsqrt.f32 %v887_v31 }
 0x458   : > { %4027 = vrsqrt.f32 %v882_v33  ;;  %v3663_v34 = vpop.f32.mrb[22].mxu0 }
 0x459   : > { %v4018_v35 = vpop.eup %4017  ;;  %v897_v37 = vadd.f32 1e-05, %v3663_v34  ;;  %v891_v38 = vpop.f32.mrb[23].mxu0 }
 0x45a   : > { %v4020_v40 = vpop.eup %4019  ;;  %v909_v42 = vmul.f32 %v4018_v35, %v4313_v39  ;;  %v892_v43 = vadd.f32 1e-05, %v891_v38 }
 0x45b   : > { %v908_v46 = vmul.f32 %v4020_v40, %v4315_v41  ;;  %4029 = vrsqrt.f32 %v897_v37 }
 0x45c   : > { %v923_v47 = vmul.f32 %v4418_v36, %v909_v42  ;;  %4031 = vrsqrt.f32 %v892_v43  ;;  %v4013_v42 = vld [vmem:[%s4951_s1 + $0x20] sm:$0xff]  }
 0x45d   : > { %v4022_v49 = vpop.eup %4021  ;;  %v922_v50 = vmul.f32 %v4418_v36, %v908_v46  ;;  %v3686_v51 = vpop.f32.mrb[24].mxu0  ;;  %3744 = vmatprep.subr.bf16.mxu0 %v4013_v42 }
 0x45e   : > { %v4024_v53 = vpop.eup %4023  ;;  %v937_v39 = vadd.f32 %v4424_v44, %v923_v47  ;;  %v911_v55 = vmul.f32 %v4022_v49, %v4321_v45  ;;  %v1157_v56 = vpop.f32.mrb[25].mxu0 }
 0x45f   : > { %v936_v57 = vadd.f32 %v4424_v44, %v922_v50  ;;  %v910_v41 = vmul.f32 %v4024_v53, %v4326_v48  ;;  %3698 = vmatprep.mubr.msk.f32.mxu1 %vm496_vm1, %v1157_v56 }
 0x460   : > { %v3359_v59 = vpack.c.bf16 %v937_v39, %v937_v39  ;;  %v925_v61 = vmul.f32 %v4418_v36, %v911_v55  ;;  %3699 = vmatmul.mubr.msk.f32.vlgmr.msra.gmra.mrb[24].mxu1 %vm496_vm1, %v3686_v51 }
 0x461   : > { %v4026_v62 = vpop.eup %4025  ;;  %v3358_v63 = vpack.c.bf16 %v936_v57, %v936_v57  ;;  %v924_v0 = vmul.f32 %v4418_v36, %v910_v41  ;;  %v3689_v1 = vpop.f32.mrb[26].mxu0  ;;  %3731 = vmatpush3.msra.mxu1 %v4284_v20 }
 0x462   : > { %v4028_v45 = vpop.eup %4027  ;;  %978 = vst.msk [vmem:[%s4440_s29 + $0x10] sm:$0xf] %vm976_vm2, %v3359_v59  ;;  %v939_v48 = vadd.f32 %v4424_v44, %v925_v61  ;;  %v913_v2 = vmul.f32 %v4026_v62, %v4334_v52  ;;  %v1167_v3 = vpop.f32.mrb[27].mxu0  ;;  %3937 = vmatprep.subr.bf16.mxu1 %v4247_v4 }
 0x463   : > { %977 = vst.msk [vmem:[%s4440_s29] sm:$0xf] %vm976_vm2, %v3358_v63  ;;  %v938_v5 = vadd.f32 %v4424_v44, %v924_v0  ;;  %v912_v6 = vmul.f32 %v4028_v45, %v4336_v54  ;;  %3701 = vmatprep.mubr.msk.f32.mxu1 %vm496_vm1, %v1167_v3 }
 0x464   : > { %v3361_v7 = vpack.c.bf16 %v939_v48, %v939_v48  ;;  %v927_v22 = vmul.f32 %v4418_v36, %v913_v2  ;;  %3702 = vmatmul.mubr.msk.f32.gmra.mrb[26].mxu1 %vm496_vm1, %v3689_v1 }
 0x465   : > { %v4030_v23 = vpop.eup %4029  ;;  %v3360_v24 = vpack.c.bf16 %v938_v5, %v938_v5  ;;  %v926_v52 = vmul.f32 %v4418_v36, %v912_v6  ;;  %v3692_v25 = vpop.f32.mrb[28].mxu0 }
 0x466   : > { %v4032_v26 = vpop.eup %4031  ;;  %980 = vst.msk [vmem:[%s4440_s29 + $0x30] sm:$0xf] %vm976_vm2, %v3361_v7  ;;  %v941_v27 = vadd.f32 %v4424_v44, %v927_v22  ;;  %v915_v54 = vmul.f32 %v4030_v23, %v4344_v58  ;;  %v1177_v28 = vpop.f32.mrb[29].mxu0 }
 0x467   : > { %979 = vst.msk [vmem:[%s4440_s29 + $0x20] sm:$0xf] %vm976_vm2, %v3360_v24  ;;  %v940_v29 = vadd.f32 %v4424_v44, %v926_v52  ;;  %v914_v30 = vmul.f32 %v4032_v26, %v4347_v60  ;;  %3704 = vmatprep.mubr.msk.f32.mxu1 %vm496_vm1, %v1177_v28 }
 0x468   : > { %v3363_v31 = vpack.c.bf16 %v941_v27, %v941_v27  ;;  %v929_v32 = vmul.f32 %v4418_v36, %v915_v54  ;;  %3705 = vmatmul.mubr.msk.f32.gmra.mrb[28].mxu1 %vm496_vm1, %v3692_v25 }
 0x469   : > { %v3362_v33 = vpack.c.bf16 %v940_v29, %v940_v29  ;;  %v928_v34 = vmul.f32 %v4418_v36, %v914_v30  ;;  %v3695_v58 = vpop.f32.mrb[30].mxu0 }
 0x46a   : > { %982 = vst.msk [vmem:[%s4440_s29 + $0x50] sm:$0xf] %vm976_vm2, %v3363_v31  ;;  %v943_v35 = vadd.f32 %v4424_v44, %v929_v32  ;;  %v1187_v37 = vpop.f32.mrb[31].mxu0 }
 0x46b   : > { %981 = vst.msk [vmem:[%s4440_s29 + $0x40] sm:$0xf] %vm976_vm2, %v3362_v33  ;;  %v942_v60 = vadd.f32 %v4424_v44, %v928_v34  ;;  %3707 = vmatprep.mubr.msk.f32.mxu1 %vm496_vm1, %v1187_v37 }
 0x46c   : > { %v3365_v38 = vpack.c.bf16 %v943_v35, %v943_v35  ;;  %3708 = vmatmul.mubr.msk.f32.gmra.mrb[30].mxu1 %vm496_vm1, %v3695_v58 }
 0x46d   : > { %v3364_v40 = vpack.c.bf16 %v942_v60, %v942_v60 }
 0x46e   : > { %984 = vst.msk [vmem:[%s4440_s29 + $0x70] sm:$0xf] %vm976_vm2, %v3365_v38 }
 0x46f   : > { %983 = vst.msk [vmem:[%s4440_s29 + $0x60] sm:$0xf] %vm976_vm2, %v3364_v40 }
 0x533   : > { %v3700_v43 = vpop.f32.mrb[24].mxu1 }
 0x534   : > { %v4483_v46 = vsub.f32 %v4387_v14, %v3700_v43  ;;  %v1286_v47 = vpop.f32.mrb[25].mxu1  ;;  %v4014_v14 = vld [vmem:[%s4951_s1 + $0x28] sm:$0xff]  }
 0x535   : > { %v4486_v49 = vsub.f32 %v4381_v10, %v1286_v47 }
 0x536   : > { %v1334_v53 = vmul.f32 %v4483_v46, %v4483_v46 }
 0x537   : > { %v1333_v50 = vmul.f32 %v4486_v49, %v4486_v49  ;;  %v3703_v51 = vpop.f32.mrb[26].mxu1 }
 0x538   : > { %v4493_v39 = vsub.f32 %v4383_v11, %v3703_v51  ;;  %v1296_v55 = vpop.f32.mrb[27].mxu1 }
 0x539   : > { %v4499_v56 = vsub.f32 %v4379_v9, %v1296_v55  ;;  %3718 = vmatprep.mubr.msk.f32.mxu0 %vm289_vm0, %v1333_v50 }
 0x53a   : > { %3719 = vmatmul.mubr.msk.f32.vlgmr.msra.gmra.mrb[32].mxu0 %vm289_vm0, %v1334_v53  ;;  %v1336_v11 = vmul.f32 %v4493_v39, %v4493_v39 }
 0x53b   : > { %v1335_v10 = vmul.f32 %v4499_v56, %v4499_v56  ;;  %3745 = vmatpush3.bf16.msra.mxu0 %v4013_v42  ;;  %v3706_v57 = vpop.f32.mrb[28].mxu1 }
 0x53c   : > { %v4508_v41 = vsub.f32 %v4406_v21, %v3706_v57  ;;  %v1306_v59 = vpop.f32.mrb[29].mxu1  ;;  %3746 = vmatprep.subr.bf16.mxu0 %v4014_v14 }
 0x53d   : > { %v4511_v9 = vsub.f32 %v4399_v17, %v1306_v59  ;;  %3721 = vmatprep.mubr.msk.f32.mxu0 %vm289_vm0, %v1335_v10 }
 0x53e   : > { %3722 = vmatmul.mubr.msk.f32.gmra.mrb[34].mxu0 %vm289_vm0, %v1336_v11  ;;  %v1338_v63 = vmul.f32 %v4508_v41, %v4508_v41 }
 0x53f   : > { %v1337_v61 = vmul.f32 %v4511_v9, %v4511_v9  ;;  %v3709_v62 = vpop.f32.mrb[30].mxu1  ;;  %3747 = vmatpush3.bf16.msra.mxu0 %v4014_v14 }
 0x540   : > { %v4520_v21 = vsub.f32 %v4402_v18, %v3709_v62  ;;  %v1316_v0 = vpop.f32.mrb[31].mxu1  ;;  %3776 = vmatprep.subr.mxu0 %v4284_v20 }
 0x541   : > { %v4524_v17 = vsub.f32 %v4395_v15, %v1316_v0  ;;  %3724 = vmatprep.mubr.msk.f32.mxu0 %vm289_vm0, %v1337_v61 }
 0x542   : > { %3725 = vmatmul.mubr.msk.f32.gmra.mrb[36].mxu0 %vm289_vm0, %v1338_v63  ;;  %v1340_v45 = vmul.f32 %v4520_v21, %v4520_v21 }
 0x543   : > { %v1339_v1 = vmul.f32 %v4524_v17, %v4524_v17 }
 0x545   : > { %3727 = vmatprep.mubr.msk.f32.mxu0 %vm289_vm0, %v1339_v1 }
 0x546   : > { %3728 = vmatmul.mubr.msk.f32.gmra.mrb[38].mxu0 %vm289_vm0, %v1340_v45 }
 0x547   : > { %3748 = vmatprep.mubr.msk.bf16.mxu0 %vm289_vm0, %v4254_v8 }
 0x54a   : > { %3749 = vmatmul.mubr.msk.bf16.vlgmr.msra.gmra.mrb[40].mxu0 %vm289_vm0, %v4256_v12 }
 0x54b   : > { %3752 = vmatprep.mubr.msk.bf16.mxu0 %vm289_vm0, %v4258_v13  ;;  %3777 = vmatpush3.msra.mxu0 %v4284_v20 }
 0x54c   : > { %3810 = vmatprep.subr.mxu0 %v4284_v20 }
 0x552   : > { %3753 = vmatmul.mubr.msk.bf16.gmra.mrb[44].mxu0 %vm289_vm0, %v4266_v16 }
 0x60d   : > { %v3720_v15 = vpop.f32.mrb[32].mxu0 }
 0x60e   : > { %v1431_v18 = vpop.f32.mrb[33].mxu0 }
 0x60f   : > { %3732 = vmatprep.mubr.msk.f32.mxu1 %vm496_vm1, %v1431_v18 }
 0x610   : > { %3733 = vmatmul.mubr.msk.f32.vlgmr.msra.gmra.mrb[32].mxu1 %vm496_vm1, %v3720_v15 }
 0x611   : > { %v3723_v48 = vpop.f32.mrb[34].mxu0  ;;  %3939 = vmatpush3.bf16.msra.mxu1 %v4247_v4 }
 0x612   : > { %v1441_v2 = vpop.f32.mrb[35].mxu0  ;;  %3941 = vmatprep.subr.bf16.mxu1 %v4276_v19 }
 0x613   : > { %3735 = vmatprep.mubr.msk.f32.mxu1 %vm496_vm1, %v1441_v2 }
 0x614   : > { %3736 = vmatmul.mubr.msk.f32.gmra.mrb[34].mxu1 %vm496_vm1, %v3723_v48 }
 0x615   : > { %v3726_v3 = vpop.f32.mrb[36].mxu0  ;;  %3943 = vmatpush3.bf16.msra.mxu1 %v4276_v19 }
 0x616   : > { %v1451_v5 = vpop.f32.mrb[37].mxu0  ;;  %3945 = vmatprep.subr.bf16.mxu1 %v4247_v4 }
 0x617   : > { %3738 = vmatprep.mubr.msk.f32.mxu1 %vm496_vm1, %v1451_v5 }
 0x618   : > { %3739 = vmatmul.mubr.msk.f32.gmra.mrb[36].mxu1 %vm496_vm1, %v3726_v3 }
 0x619   : > { %v3729_v6 = vpop.f32.mrb[38].mxu0 }
 0x61a   : > { %v1461_v7 = vpop.f32.mrb[39].mxu0 }
 0x61b   : > { %3741 = vmatprep.mubr.msk.f32.mxu1 %vm496_vm1, %v1461_v7 }
 0x61c   : > { %3742 = vmatmul.mubr.msk.f32.gmra.mrb[38].mxu1 %vm496_vm1, %v3729_v6 }
 0x61d   : > { %v4556_v22 = vpop.f32.mrb[40].mxu0 }
 0x61e   : > { %v4558_v23 = vpop.f32.mrb[41].mxu0 }
 0x61f   : > { %v4560_v24 = vpop.f32.mrb[42].mxu0  ;;  %3764 = vmatprep.mubr.msk.f32.mxu1 %vm289_vm0, %v4558_v23 }
 0x620   : > { %v4564_v52 = vpop.f32.mrb[43].mxu0 }
 0x621   : > { %3765 = vmatmul.mubr.msk.f32.vlgmr.msra.gmra.mrb[40].mxu1 %vm289_vm0, %v4564_v52 }
 0x622   : > { %3767 = vmatprep.mubr.msk.f32.mxu1 %vm289_vm0, %v4556_v22  ;;  %3947 = vmatpush3.bf16.msra.mxu1 %v4247_v4 }
 0x623   : > { %3949 = vmatprep.subr.bf16.mxu1 %v4276_v19 }
 0x625   : > { %v4572_v25 = vpop.f32.mrb[44].mxu0  ;;  %3768 = vmatmul.mubr.msk.f32.gmra.mrb[42].mxu1 %vm289_vm0, %v4560_v24 }
 0x626   : > { %v4576_v26 = vpop.f32.mrb[45].mxu0  ;;  %3951 = vmatpush3.bf16.msra.mxu1 %v4276_v19 }
 0x627   : > { %v4579_v27 = vpop.f32.mrb[46].mxu0  ;;  %3770 = vmatprep.mubr.msk.f32.mxu1 %vm289_vm0, %v4576_v26 }
 0x628   : > { %v4583_v54 = vpop.f32.mrb[47].mxu0 }
 0x629   : > { %3771 = vmatmul.mubr.msk.f32.gmra.mrb[44].mxu1 %vm289_vm0, %v4583_v54 }
 0x62a   : > { %3773 = vmatprep.mubr.msk.f32.mxu1 %vm289_vm0, %v4572_v25 }
 0x62d   : > { %3774 = vmatmul.mubr.msk.f32.gmra.mrb[46].mxu1 %vm289_vm0, %v4579_v27 }
 0x6e3   : > { %v3734_v28 = vpop.f32.mrb[32].mxu1 }
 0x6e4   : > { %v1566_v29 = vadd.f32 1e-05, %v3734_v28  ;;  %v1560_v30 = vpop.f32.mrb[33].mxu1 }
 0x6e5   : > { %v1561_v31 = vadd.f32 1e-05, %v1560_v30 }
 0x6e6   : > { %4033 = vrsqrt.f32 %v1566_v29 }
 0x6e7   : > { %4035 = vrsqrt.f32 %v1561_v31  ;;  %v3737_v32 = vpop.f32.mrb[34].mxu1 }
 0x6e8   : > { %v1576_v33 = vadd.f32 1e-05, %v3737_v32  ;;  %v1570_v34 = vpop.f32.mrb[35].mxu1 }
 0x6e9   : > { %v1571_v58 = vadd.f32 1e-05, %v1570_v34 }
 0x6ea   : > { %4037 = vrsqrt.f32 %v1576_v33 }
 0x6eb   : > { %4039 = vrsqrt.f32 %v1571_v58  ;;  %v3740_v35 = vpop.f32.mrb[36].mxu1 }
 0x6ec   : > { %v1586_v37 = vadd.f32 1e-05, %v3740_v35  ;;  %v1580_v60 = vpop.f32.mrb[37].mxu1 }
 0x6ed   : > { %v1581_v38 = vadd.f32 1e-05, %v1580_v60 }
 0x6ee   : > { %4041 = vrsqrt.f32 %v1586_v37 }
 0x6ef   : > { %4043 = vrsqrt.f32 %v1581_v38  ;;  %v3743_v40 = vpop.f32.mrb[38].mxu1 }
 0x6f0   : > { %v4034_v42 = vpop.eup %4033  ;;  %v1596_v43 = vadd.f32 1e-05, %v3743_v40  ;;  %v1590_v47 = vpop.f32.mrb[39].mxu1 }
 0x6f1   : > { %v4036_v50 = vpop.eup %4035  ;;  %v1608_v51 = vmul.f32 %v4034_v42, %v4483_v46  ;;  %v1591_v53 = vadd.f32 1e-05, %v1590_v47 }
 0x6f2   : > { %v1607_v55 = vmul.f32 %v4036_v50, %v4486_v49  ;;  %4045 = vrsqrt.f32 %v1596_v43 }
 0x6f3   : > { %v1616_v14 = vmul.f32 %v4418_v36, %v1608_v51  ;;  %4047 = vrsqrt.f32 %v1591_v53  ;;  %v4015_v51 = vld [vmem:[%s4951_s1 + $0x30] sm:$0xff]  }
 0x6f4   : > { %v4038_v10 = vpop.eup %4037  ;;  %v1615_v57 = vmul.f32 %v4418_v36, %v1607_v55  ;;  %v3766_v11 = vpop.f32.mrb[40].mxu1  ;;  %3824 = vmatprep.subr.bf16.mxu1 %v4015_v51 }
 0x6f5   : > { %v4040_v59 = vpop.eup %4039  ;;  %v1624_v61 = vadd.f32 %v4424_v44, %v1616_v14  ;;  %v1610_v62 = vmul.f32 %v4038_v10, %v4493_v39  ;;  %v1844_v63 = vpop.f32.mrb[41].mxu1 }
 0x6f6   : > { %v1623_v46 = vadd.f32 %v4424_v44, %v1615_v57  ;;  %v1609_v0 = vmul.f32 %v4040_v59, %v4499_v56  ;;  %3778 = vmatprep.mubr.msk.f32.mxu0 %vm496_vm1, %v1844_v63 }
 0x6f7   : > { %v3367_v49 = vpack.c.bf16 %v1624_v61, %v1624_v61  ;;  %v1618_v1 = vmul.f32 %v4418_v36, %v1610_v62  ;;  %3779 = vmatmul.mubr.msk.f32.vlgmr.msra.gmra.mrb[48].mxu0 %vm496_vm1, %v3766_v11 }
 0x6f8   : > { %v4042_v45 = vpop.eup %4041  ;;  %v3366_v15 = vpack.c.bf16 %v1623_v46, %v1623_v46  ;;  %v1617_v18 = vmul.f32 %v4418_v36, %v1609_v0  ;;  %v3769_v48 = vpop.f32.mrb[42].mxu1  ;;  %3811 = vmatpush3.msra.mxu0 %v4284_v20 }
 0x6f9   : > { %v4044_v39 = vpop.eup %4043  ;;  %3229 = vst.msk [vmem:[%s4440_s29 + $0x14] sm:$0xf] %vm976_vm2, %v3367_v49  ;;  %v1626_v56 = vadd.f32 %v4424_v44, %v1618_v1  ;;  %v1612_v2 = vmul.f32 %v4042_v45, %v4508_v41  ;;  %v1854_v3 = vpop.f32.mrb[43].mxu1  ;;  %3953 = vmatprep.subr.bf16.mxu0 %v4247_v4 }
 0x6fa   : > { %3228 = vst.msk [vmem:[%s4440_s29 + $0x4] sm:$0xf] %vm976_vm2, %v3366_v15  ;;  %v1625_v5 = vadd.f32 %v4424_v44, %v1617_v18  ;;  %v1611_v6 = vmul.f32 %v4044_v39, %v4511_v9  ;;  %3781 = vmatprep.mubr.msk.f32.mxu0 %vm496_vm1, %v1854_v3 }
 0x6fb   : > { %v3369_v7 = vpack.c.bf16 %v1626_v56, %v1626_v56  ;;  %v1620_v28 = vmul.f32 %v4418_v36, %v1612_v2  ;;  %3782 = vmatmul.mubr.msk.f32.gmra.mrb[50].mxu0 %vm496_vm1, %v3769_v48 }
 0x6fc   : > { %v4046_v29 = vpop.eup %4045  ;;  %v3368_v30 = vpack.c.bf16 %v1625_v5, %v1625_v5  ;;  %v1619_v41 = vmul.f32 %v4418_v36, %v1611_v6  ;;  %v3772_v31 = vpop.f32.mrb[44].mxu1 }
 0x6fd   : > { %v4048_v32 = vpop.eup %4047  ;;  %3231 = vst.msk [vmem:[%s4440_s29 + $0x34] sm:$0xf] %vm976_vm2, %v3369_v7  ;;  %v1628_v33 = vadd.f32 %v4424_v44, %v1620_v28  ;;  %v1614_v9 = vmul.f32 %v4046_v29, %v4520_v21  ;;  %v1864_v34 = vpop.f32.mrb[45].mxu1 }
 0x6fe   : > { %3230 = vst.msk [vmem:[%s4440_s29 + $0x24] sm:$0xf] %vm976_vm2, %v3368_v30  ;;  %v1627_v58 = vadd.f32 %v4424_v44, %v1619_v41  ;;  %v1613_v35 = vmul.f32 %v4048_v32, %v4524_v17  ;;  %3784 = vmatprep.mubr.msk.f32.mxu0 %vm496_vm1, %v1864_v34 }
 0x6ff   : > { %v3371_v37 = vpack.c.bf16 %v1628_v33, %v1628_v33  ;;  %v1622_v60 = vmul.f32 %v4418_v36, %v1614_v9  ;;  %3785 = vmatmul.mubr.msk.f32.gmra.mrb[52].mxu0 %vm496_vm1, %v3772_v31 }
 0x700   : > { %v3370_v38 = vpack.c.bf16 %v1627_v58, %v1627_v58  ;;  %v1621_v40 = vmul.f32 %v4418_v36, %v1613_v35  ;;  %v3775_v21 = vpop.f32.mrb[46].mxu1 }
 0x701   : > { %3233 = vst.msk [vmem:[%s4440_s29 + $0x54] sm:$0xf] %vm976_vm2, %v3371_v37  ;;  %v1630_v42 = vadd.f32 %v4424_v44, %v1622_v60  ;;  %v1874_v43 = vpop.f32.mrb[47].mxu1 }
 0x702   : > { %3232 = vst.msk [vmem:[%s4440_s29 + $0x44] sm:$0xf] %vm976_vm2, %v3370_v38  ;;  %v1629_v17 = vadd.f32 %v4424_v44, %v1621_v40  ;;  %3787 = vmatprep.mubr.msk.f32.mxu0 %vm496_vm1, %v1874_v43 }
 0x703   : > { %v3373_v47 = vpack.c.bf16 %v1630_v42, %v1630_v42  ;;  %3788 = vmatmul.mubr.msk.f32.gmra.mrb[54].mxu0 %vm496_vm1, %v3775_v21 }
 0x704   : > { %v3372_v50 = vpack.c.bf16 %v1629_v17, %v1629_v17 }
 0x705   : > { %3235 = vst.msk [vmem:[%s4440_s29 + $0x74] sm:$0xf] %vm976_vm2, %v3373_v47 }
 0x706   : > { %3234 = vst.msk [vmem:[%s4440_s29 + $0x64] sm:$0xf] %vm976_vm2, %v3372_v50 }
 0x7ca   : > { %v3780_v53 = vpop.f32.mrb[48].mxu0 }
 0x7cb   : > { %v4645_v55 = vsub.f32 %v4564_v52, %v3780_v53  ;;  %v1973_v14 = vpop.f32.mrb[49].mxu0  ;;  %v4016_v52 = vld [vmem:[%s4951_s1 + $0x38] sm:$0xff]  }
 0x7cc   : > { %v4648_v10 = vsub.f32 %v4558_v23, %v1973_v14 }
 0x7cd   : > { %v2021_v59 = vmul.f32 %v4645_v55, %v4645_v55 }
 0x7ce   : > { %v2020_v57 = vmul.f32 %v4648_v10, %v4648_v10  ;;  %v3783_v11 = vpop.f32.mrb[50].mxu0 }
 0x7cf   : > { %v4655_v61 = vsub.f32 %v4560_v24, %v3783_v11  ;;  %v1983_v62 = vpop.f32.mrb[51].mxu0 }
 0x7d0   : > { %v4661_v63 = vsub.f32 %v4556_v22, %v1983_v62  ;;  %3798 = vmatprep.mubr.msk.f32.mxu1 %vm289_vm0, %v2020_v57 }
 0x7d1   : > { %3799 = vmatmul.mubr.msk.f32.vlgmr.msra.gmra.mrb[48].mxu1 %vm289_vm0, %v2021_v59  ;;  %v2023_v24 = vmul.f32 %v4655_v61, %v4655_v61 }
 0x7d2   : > { %v2022_v23 = vmul.f32 %v4661_v63, %v4661_v63  ;;  %3825 = vmatpush3.bf16.msra.mxu1 %v4015_v51  ;;  %v3786_v46 = vpop.f32.mrb[52].mxu0 }
 0x7d3   : > { %v4670_v0 = vsub.f32 %v4583_v54, %v3786_v46  ;;  %v1993_v49 = vpop.f32.mrb[53].mxu0  ;;  %3826 = vmatprep.subr.bf16.mxu1 %v4016_v52 }
 0x7d4   : > { %v4673_v22 = vsub.f32 %v4576_v26, %v1993_v49  ;;  %3801 = vmatprep.mubr.msk.f32.mxu1 %vm289_vm0, %v2022_v23 }
 0x7d5   : > { %3802 = vmatmul.mubr.msk.f32.gmra.mrb[50].mxu1 %vm289_vm0, %v2023_v24  ;;  %v2025_v15 = vmul.f32 %v4670_v0, %v4670_v0 }
 0x7d6   : > { %v2024_v1 = vmul.f32 %v4673_v22, %v4673_v22  ;;  %v3789_v45 = vpop.f32.mrb[54].mxu0  ;;  %3827 = vmatpush3.bf16.msra.mxu1 %v4016_v52 }
 0x7d7   : > { %v4682_v54 = vsub.f32 %v4579_v27, %v3789_v45  ;;  %v2003_v18 = vpop.f32.mrb[55].mxu0  ;;  %3856 = vmatprep.subr.mxu1 %v4284_v20 }
 0x7d8   : > { %v4686_v26 = vsub.f32 %v4572_v25, %v2003_v18  ;;  %3804 = vmatprep.mubr.msk.f32.mxu1 %vm289_vm0, %v2024_v1 }
 0x7d9   : > { %3805 = vmatmul.mubr.msk.f32.gmra.mrb[52].mxu1 %vm289_vm0, %v2025_v15  ;;  %v2027_v39 = vmul.f32 %v4682_v54, %v4682_v54 }
 0x7da   : > { %v2026_v48 = vmul.f32 %v4686_v26, %v4686_v26 }
 0x7dc   : > { %3807 = vmatprep.mubr.msk.f32.mxu1 %vm289_vm0, %v2026_v48 }
 0x7dd   : > { %3808 = vmatmul.mubr.msk.f32.gmra.mrb[54].mxu1 %vm289_vm0, %v2027_v39 }
 0x7de   : > { %3828 = vmatprep.mubr.msk.bf16.mxu1 %vm289_vm0, %v4254_v8 }
 0x7e1   : > { %3829 = vmatmul.mubr.msk.bf16.vlgmr.msra.gmra.mrb[56].mxu1 %vm289_vm0, %v4256_v12 }
 0x7e2   : > { %3832 = vmatprep.mubr.msk.bf16.mxu1 %vm289_vm0, %v4258_v13  ;;  %3857 = vmatpush3.msra.mxu1 %v4284_v20 }
 0x7e3   : > { %3890 = vmatprep.subr.mxu1 %v4284_v20 }
 0x7e9   : > { %3833 = vmatmul.mubr.msk.bf16.gmra.mrb[60].mxu1 %vm289_vm0, %v4266_v16 }
 0x8a4   : > { %v3800_v25 = vpop.f32.mrb[48].mxu1 }
 0x8a5   : > { %v2118_v27 = vpop.f32.mrb[49].mxu1 }
 0x8a6   : > { %3812 = vmatprep.mubr.msk.f32.mxu0 %vm496_vm1, %v2118_v27 }
 0x8a7   : > { %3813 = vmatmul.mubr.msk.f32.vlgmr.msra.gmra.mrb[56].mxu0 %vm496_vm1, %v3800_v25 }
 0x8a8   : > { %v3803_v8 = vpop.f32.mrb[50].mxu1  ;;  %3955 = vmatpush3.bf16.msra.mxu0 %v4247_v4 }
 0x8a9   : > { %v2128_v12 = vpop.f32.mrb[51].mxu1  ;;  %3957 = vmatprep.subr.bf16.mxu0 %v4276_v19 }
 0x8aa   : > { %3815 = vmatprep.mubr.msk.f32.mxu0 %vm496_vm1, %v2128_v12 }
 0x8ab   : > { %3816 = vmatmul.mubr.msk.f32.gmra.mrb[58].mxu0 %vm496_vm1, %v3803_v8 }
 0x8ac   : > { %v3806_v13 = vpop.f32.mrb[52].mxu1  ;;  %3959 = vmatpush3.bf16.msra.mxu0 %v4276_v19 }
 0x8ad   : > { %v2138_v16 = vpop.f32.mrb[53].mxu1  ;;  %3961 = vmatprep.subr.bf16.mxu0 %v4247_v4 }
 0x8ae   : > { %3818 = vmatprep.mubr.msk.f32.mxu0 %vm496_vm1, %v2138_v16 }
 0x8af   : > { %3819 = vmatmul.mubr.msk.f32.gmra.mrb[60].mxu0 %vm496_vm1, %v3806_v13 }
 0x8b0   : > { %v3809_v20 = vpop.f32.mrb[54].mxu1 }
 0x8b1   : > { %v2148_v56 = vpop.f32.mrb[55].mxu1 }
 0x8b2   : > { %3821 = vmatprep.mubr.msk.f32.mxu0 %vm496_vm1, %v2148_v56 }
 0x8b3   : > { %3822 = vmatmul.mubr.msk.f32.gmra.mrb[62].mxu0 %vm496_vm1, %v3809_v20 }
 0x8b4   : > { %v4718_v2 = vpop.f32.mrb[56].mxu1 }
 0x8b5   : > { %v4720_v3 = vpop.f32.mrb[57].mxu1 }
 0x8b6   : > { %v4722_v5 = vpop.f32.mrb[58].mxu1  ;;  %3844 = vmatprep.mubr.msk.f32.mxu0 %vm289_vm0, %v4720_v3 }
 0x8b7   : > { %v4726_v6 = vpop.f32.mrb[59].mxu1 }
 0x8b8   : > { %3845 = vmatmul.mubr.msk.f32.vlgmr.msra.gmra.mrb[64].mxu0 %vm289_vm0, %v4726_v6 }
 0x8b9   : > { %3847 = vmatprep.mubr.msk.f32.mxu0 %vm289_vm0, %v4718_v2  ;;  %3963 = vmatpush3.bf16.msra.mxu0 %v4247_v4 }
 0x8ba   : > { %3965 = vmatprep.subr.bf16.mxu0 %v4276_v19 }
 0x8bc   : > { %v4734_v7 = vpop.f32.mrb[60].mxu1  ;;  %3848 = vmatmul.mubr.msk.f32.gmra.mrb[66].mxu0 %vm289_vm0, %v4722_v5 }
 0x8bd   : > { %v4738_v28 = vpop.f32.mrb[61].mxu1  ;;  %3967 = vmatpush3.bf16.msra.mxu0 %v4276_v19 }
 0x8be   : > { %v4741_v29 = vpop.f32.mrb[62].mxu1  ;;  %3850 = vmatprep.mubr.msk.f32.mxu0 %vm289_vm0, %v4738_v28 }
 0x8bf   : > { %v4745_v30 = vpop.f32.mrb[63].mxu1 }
 0x8c0   : > { %3851 = vmatmul.mubr.msk.f32.gmra.mrb[68].mxu0 %vm289_vm0, %v4745_v30 }
 0x8c1   : > { %3853 = vmatprep.mubr.msk.f32.mxu0 %vm289_vm0, %v4734_v7 }
 0x8c4   : > { %3854 = vmatmul.mubr.msk.f32.gmra.mrb[70].mxu0 %vm289_vm0, %v4741_v29 }
 0x97a   : > { %v3814_v4 = vpop.f32.mrb[56].mxu0 }
 0x97b   : > { %v2253_v41 = vadd.f32 1e-05, %v3814_v4  ;;  %v2247_v31 = vpop.f32.mrb[57].mxu0 }
 0x97c   : > { %v2248_v19 = vadd.f32 1e-05, %v2247_v31 }
 0x97d   : > { %4049 = vrsqrt.f32 %v2253_v41 }
 0x97e   : > { %4051 = vrsqrt.f32 %v2248_v19  ;;  %v3817_v32 = vpop.f32.mrb[58].mxu0 }
 0x97f   : > { %v2263_v33 = vadd.f32 1e-05, %v3817_v32  ;;  %v2257_v9 = vpop.f32.mrb[59].mxu0 }
 0x980   : > { %v2258_v34 = vadd.f32 1e-05, %v2257_v9 }
 0x981   : > { %4053 = vrsqrt.f32 %v2263_v33 }
 0x982   : > { %4055 = vrsqrt.f32 %v2258_v34  ;;  %v3820_v58 = vpop.f32.mrb[60].mxu0 }
 0x983   : > { %v2273_v35 = vadd.f32 1e-05, %v3820_v58  ;;  %v2267_v37 = vpop.f32.mrb[61].mxu0 }
 0x984   : > { %v2268_v60 = vadd.f32 1e-05, %v2267_v37 }
 0x985   : > { %4057 = vrsqrt.f32 %v2273_v35 }
 0x986   : > { %4059 = vrsqrt.f32 %v2268_v60  ;;  %v3823_v38 = vpop.f32.mrb[62].mxu0 }
 0x987   : > { %v4050_v40 = vpop.eup %4049  ;;  %v2283_v21 = vadd.f32 1e-05, %v3823_v38  ;;  %v2277_v42 = vpop.f32.mrb[63].mxu0 }
 0x988   : > { %v4052_v43 = vpop.eup %4051  ;;  %v2295_v17 = vmul.f32 %v4050_v40, %v4645_v55  ;;  %v2278_v47 = vadd.f32 1e-05, %v2277_v42 }
 0x989   : > { %v2294_v50 = vmul.f32 %v4052_v43, %v4648_v10  ;;  %4061 = vrsqrt.f32 %v2283_v21 }
 0x98a   : > { %v2303_v51 = vmul.f32 %v4418_v36, %v2295_v17  ;;  %4063 = vrsqrt.f32 %v2278_v47 }
 0x98b   : > { %v4054_v53 = vpop.eup %4053  ;;  %v2302_v14 = vmul.f32 %v4418_v36, %v2294_v50  ;;  %v3846_v57 = vpop.f32.mrb[64].mxu0 }
 0x98c   : > { %v4056_v11 = vpop.eup %4055  ;;  %v2311_v59 = vadd.f32 %v4424_v44, %v2303_v51  ;;  %v2297_v62 = vmul.f32 %v4054_v53, %v4655_v61  ;;  %v2531_v52 = vpop.f32.mrb[65].mxu0  ;;  %v4081_v61 = vld [vmem:[%s4953_s3] sm:$0xff] }
 0x98d   : > { %v2310_v55 = vadd.f32 %v4424_v44, %v2302_v14  ;;  %v2296_v23 = vmul.f32 %v4056_v11, %v4661_v63  ;;  %3858 = vmatprep.mubr.msk.f32.mxu1 %vm496_vm1, %v2531_v52 }
 0x98e   : > { %v3375_v10 = vpack.c.bf16 %v2311_v59, %v2311_v59  ;;  %v2305_v46 = vmul.f32 %v4418_v36, %v2297_v62  ;;  %3859 = vmatmul.mubr.msk.f32.vlgmr.msra.gmra.mrb[64].mxu1 %vm496_vm1, %v3846_v57 }
 0x98f   : > { %v4058_v24 = vpop.eup %4057  ;;  %v3374_v49 = vpack.c.bf16 %v2310_v55, %v2310_v55  ;;  %v2304_v1 = vmul.f32 %v4418_v36, %v2296_v23  ;;  %v3849_v45 = vpop.f32.mrb[66].mxu0  ;;  %3891 = vmatpush3.msra.mxu1 %v4081_v61 }
 0x990   : > { %v4060_v15 = vpop.eup %4059  ;;  %3287 = vst.msk [vmem:[%s4440_s29 + $0x18] sm:$0xf] %vm976_vm2, %v3375_v10  ;;  %v2313_v63 = vadd.f32 %v4424_v44, %v2305_v46  ;;  %v2299_v18 = vmul.f32 %v4058_v24, %v4670_v0  ;;  %v2541_v48 = vpop.f32.mrb[67].mxu0 }
 0x991   : > { %3286 = vst.msk [vmem:[%s4440_s29 + $0x8] sm:$0xf] %vm976_vm2, %v3374_v49  ;;  %v2312_v39 = vadd.f32 %v4424_v44, %v2304_v1  ;;  %v2298_v25 = vmul.f32 %v4060_v15, %v4673_v22  ;;  %3861 = vmatprep.mubr.msk.f32.mxu1 %vm496_vm1, %v2541_v48 }
 0x992   : > { %v3377_v27 = vpack.c.bf16 %v2313_v63, %v2313_v63  ;;  %v2307_v8 = vmul.f32 %v4418_v36, %v2299_v18  ;;  %3862 = vmatmul.mubr.msk.f32.gmra.mrb[66].mxu1 %vm496_vm1, %v3849_v45 }
 0x993   : > { %v4062_v12 = vpop.eup %4061  ;;  %v3376_v13 = vpack.c.bf16 %v2312_v39, %v2312_v39  ;;  %v2306_v16 = vmul.f32 %v4418_v36, %v2298_v25  ;;  %v3852_v0 = vpop.f32.mrb[68].mxu0 }
 0x994   : > { %v4064_v20 = vpop.eup %4063  ;;  %3289 = vst.msk [vmem:[%s4440_s29 + $0x38] sm:$0xf] %vm976_vm2, %v3377_v27  ;;  %v2315_v56 = vadd.f32 %v4424_v44, %v2307_v8  ;;  %v2301_v22 = vmul.f32 %v4062_v12, %v4682_v54  ;;  %v2551_v4 = vpop.f32.mrb[69].mxu0 }
 0x995   : > { %3288 = vst.msk [vmem:[%s4440_s29 + $0x28] sm:$0xf] %vm976_vm2, %v3376_v13  ;;  %v2314_v41 = vadd.f32 %v4424_v44, %v2306_v16  ;;  %v2300_v31 = vmul.f32 %v4064_v20, %v4686_v26  ;;  %3864 = vmatprep.mubr.msk.f32.mxu1 %vm496_vm1, %v2551_v4 }
 0x996   : > { %v3379_v19 = vpack.c.bf16 %v2315_v56, %v2315_v56  ;;  %v2309_v32 = vmul.f32 %v4418_v36, %v2301_v22  ;;  %3865 = vmatmul.mubr.msk.f32.gmra.mrb[68].mxu1 %vm496_vm1, %v3852_v0 }
 0x997   : > { %v3378_v33 = vpack.c.bf16 %v2314_v41, %v2314_v41  ;;  %v2308_v9 = vmul.f32 %v4418_v36, %v2300_v31  ;;  %v3855_v54 = vpop.f32.mrb[70].mxu0 }
 0x998   : > { %3291 = vst.msk [vmem:[%s4440_s29 + $0x58] sm:$0xf] %vm976_vm2, %v3379_v19  ;;  %v2317_v34 = vadd.f32 %v4424_v44, %v2309_v32  ;;  %v2561_v58 = vpop.f32.mrb[71].mxu0 }
 0x999   : > { %3290 = vst.msk [vmem:[%s4440_s29 + $0x48] sm:$0xf] %vm976_vm2, %v3378_v33  ;;  %v2316_v26 = vadd.f32 %v4424_v44, %v2308_v9  ;;  %3867 = vmatprep.mubr.msk.f32.mxu1 %vm496_vm1, %v2561_v58 }
 0x99a   : > { %v3381_v35 = vpack.c.bf16 %v2317_v34, %v2317_v34  ;;  %3868 = vmatmul.mubr.msk.f32.gmra.mrb[70].mxu1 %vm496_vm1, %v3855_v54 }
 0x99b   : > { %v3380_v37 = vpack.c.bf16 %v2316_v26, %v2316_v26 }
 0x99c   : > { %3293 = vst.msk [vmem:[%s4440_s29 + $0x78] sm:$0xf] %vm976_vm2, %v3381_v35 }
 0x99d   : > { %3292 = vst.msk [vmem:[%s4440_s29 + $0x68] sm:$0xf] %vm976_vm2, %v3380_v37 }
 0xa61   : > { %v3860_v60 = vpop.f32.mrb[64].mxu1 }
 0xa62   : > { %v4805_v38 = vsub.f32 %v4726_v6, %v3860_v60  ;;  %v2660_v40 = vpop.f32.mrb[65].mxu1 }
 0xa63   : > { %v4808_v21 = vsub.f32 %v4720_v3, %v2660_v40 }
 0xa64   : > { %v2708_v17 = vmul.f32 %v4805_v38, %v4805_v38 }
 0xa65   : > { %v2707_v42 = vmul.f32 %v4808_v21, %v4808_v21  ;;  %v3863_v43 = vpop.f32.mrb[66].mxu1 }
 0xa66   : > { %v4815_v47 = vsub.f32 %v4722_v5, %v3863_v43  ;;  %v2670_v50 = vpop.f32.mrb[67].mxu1 }
 0xa67   : > { %v4818_v51 = vsub.f32 %v4718_v2, %v2670_v50  ;;  %3878 = vmatprep.mubr.msk.f32.mxu0 %vm289_vm0, %v2707_v42 }
 0xa68   : > { %3879 = vmatmul.mubr.msk.f32.vlgmr.msra.gmra.mrb[72].mxu0 %vm289_vm0, %v2708_v17  ;;  %v2710_v53 = vmul.f32 %v4815_v47, %v4815_v47 }
 0xa69   : > { %v2709_v3 = vmul.f32 %v4818_v51, %v4818_v51  ;;  %v3866_v6 = vpop.f32.mrb[68].mxu1 }
 0xa6a   : > { %v4827_v14 = vsub.f32 %v4745_v30, %v3866_v6  ;;  %v2680_v5 = vpop.f32.mrb[69].mxu1 }
 0xa6b   : > { %v4830_v57 = vsub.f32 %v4738_v28, %v2680_v5  ;;  %3881 = vmatprep.mubr.msk.f32.mxu0 %vm289_vm0, %v2709_v3 }
 0xa6c   : > { %3882 = vmatmul.mubr.msk.f32.gmra.mrb[74].mxu0 %vm289_vm0, %v2710_v53  ;;  %v2712_v59 = vmul.f32 %v4827_v14, %v4827_v14 }
 0xa6d   : > { %v2711_v2 = vmul.f32 %v4830_v57, %v4830_v57  ;;  %v3869_v11 = vpop.f32.mrb[70].mxu1 }
 0xa6e   : > { %v4839_v62 = vsub.f32 %v4741_v29, %v3869_v11  ;;  %v2690_v30 = vpop.f32.mrb[71].mxu1 }
 0xa6f   : > { %v4842_v52 = vsub.f32 %v4734_v7, %v2690_v30  ;;  %3884 = vmatprep.mubr.msk.f32.mxu0 %vm289_vm0, %v2711_v2 }
 0xa70   : > { %3885 = vmatmul.mubr.msk.f32.gmra.mrb[76].mxu0 %vm289_vm0, %v2712_v59  ;;  %v2714_v55 = vmul.f32 %v4839_v62, %v4839_v62 }
 0xa71   : > { %v2713_v28 = vmul.f32 %v4842_v52, %v4842_v52 }
 0xa73   : > { %3887 = vmatprep.mubr.msk.f32.mxu0 %vm289_vm0, %v2713_v28 }
 0xa74   : > { %3888 = vmatmul.mubr.msk.f32.gmra.mrb[78].mxu0 %vm289_vm0, %v2714_v55 }
 0xb3b   : > { %v3880_v29 = vpop.f32.mrb[72].mxu0 }
 0xb3c   : > { %v2805_v23 = vpop.f32.mrb[73].mxu0 }
 0xb3d   : > { %3892 = vmatprep.mubr.msk.f32.mxu1 %vm496_vm1, %v2805_v23 }
 0xb3e   : > { %3893 = vmatmul.mubr.msk.f32.vlgmr.msra.gmra.mrb[72].mxu1 %vm496_vm1, %v3880_v29 }
 0xb3f   : > { %v3883_v7 = vpop.f32.mrb[74].mxu0 }
 0xb40   : > { %v2815_v10 = vpop.f32.mrb[75].mxu0 }
 0xb41   : > { %3895 = vmatprep.mubr.msk.f32.mxu1 %vm496_vm1, %v2815_v10 }
 0xb42   : > { %3896 = vmatmul.mubr.msk.f32.gmra.mrb[74].mxu1 %vm496_vm1, %v3883_v7 }
 0xb43   : > { %v3886_v46 = vpop.f32.mrb[76].mxu0 }
 0xb44   : > { %v2825_v24 = vpop.f32.mrb[77].mxu0 }
 0xb45   : > { %3898 = vmatprep.mubr.msk.f32.mxu1 %vm496_vm1, %v2825_v24 }
 0xb46   : > { %3899 = vmatmul.mubr.msk.f32.gmra.mrb[76].mxu1 %vm496_vm1, %v3886_v46 }
 0xb47   : > { %v3889_v49 = vpop.f32.mrb[78].mxu0 }
 0xb48   : > { %v2835_v1 = vpop.f32.mrb[79].mxu0 }
 0xb49   : > { %3901 = vmatprep.mubr.msk.f32.mxu1 %vm496_vm1, %v2835_v1 }
 0xb4a   : > { %3902 = vmatmul.mubr.msk.f32.gmra.mrb[78].mxu1 %vm496_vm1, %v3889_v49 }
 0xc11   : > { %v3894_v45 = vpop.f32.mrb[72].mxu1 }
 0xc12   : > { %v2940_v61 = vadd.f32 1e-05, %v3894_v45  ;;  %v2934_v15 = vpop.f32.mrb[73].mxu1 }
 0xc13   : > { %v2935_v63 = vadd.f32 1e-05, %v2934_v15 }
 0xc14   : > { %4065 = vrsqrt.f32 %v2940_v61 }
 0xc15   : > { %4067 = vrsqrt.f32 %v2935_v63  ;;  %v3897_v18 = vpop.f32.mrb[74].mxu1 }
 0xc16   : > { %v2950_v48 = vadd.f32 1e-05, %v3897_v18  ;;  %v2944_v39 = vpop.f32.mrb[75].mxu1 }
 0xc17   : > { %v2945_v25 = vadd.f32 1e-05, %v2944_v39 }
 0xc18   : > { %4069 = vrsqrt.f32 %v2950_v48 }
 0xc19   : > { %4071 = vrsqrt.f32 %v2945_v25  ;;  %v3900_v27 = vpop.f32.mrb[76].mxu1 }
 0xc1a   : > { %v2960_v8 = vadd.f32 1e-05, %v3900_v27  ;;  %v2954_v12 = vpop.f32.mrb[77].mxu1 }
 0xc1b   : > { %v2955_v13 = vadd.f32 1e-05, %v2954_v12 }
 0xc1c   : > { %4073 = vrsqrt.f32 %v2960_v8 }
 0xc1d   : > { %4075 = vrsqrt.f32 %v2955_v13  ;;  %v3903_v16 = vpop.f32.mrb[78].mxu1 }
 0xc1e   : > { %v4066_v0 = vpop.eup %4065  ;;  %v2970_v20 = vadd.f32 1e-05, %v3903_v16  ;;  %v2964_v56 = vpop.f32.mrb[79].mxu1 }
 0xc1f   : > { %v4068_v22 = vpop.eup %4067  ;;  %v2982_v4 = vmul.f32 %v4066_v0, %v4805_v38  ;;  %v2965_v41 = vadd.f32 1e-05, %v2964_v56 }
 0xc20   : > { %v2981_v31 = vmul.f32 %v4068_v22, %v4808_v21  ;;  %4077 = vrsqrt.f32 %v2970_v20 }
 0xc21   : > { %v2990_v19 = vmul.f32 %v4418_v36, %v2982_v4  ;;  %4079 = vrsqrt.f32 %v2965_v41 }
 0xc22   : > { %v4070_v32 = vpop.eup %4069  ;;  %v2989_v33 = vmul.f32 %v4418_v36, %v2981_v31 }
 0xc23   : > { %v4072_v9 = vpop.eup %4071  ;;  %v2998_v54 = vadd.f32 %v4424_v44, %v2990_v19  ;;  %v2984_v34 = vmul.f32 %v4070_v32, %v4815_v47 }
 0xc24   : > { %v2997_v58 = vadd.f32 %v4424_v44, %v2989_v33  ;;  %v2983_v26 = vmul.f32 %v4072_v9, %v4818_v51  ;;  %v4082_v51 = vld [vmem:[%s4954_s4] ss:$0 sm:$0xff] }
 0xc25   : > { %v3383_v35 = vpack.c.bf16 %v2998_v54, %v2998_v54  ;;  %v2992_v37 = vmul.f32 %v4418_v36, %v2984_v34 }
 0xc26   : > { %v4074_v60 = vpop.eup %4073  ;;  %v3382_v38 = vpack.c.bf16 %v2997_v58, %v2997_v58  ;;  %v2991_v40 = vmul.f32 %v4418_v36, %v2983_v26 }
 0xc27   : > { %v4076_v21 = vpop.eup %4075  ;;  %3345 = vst.msk [vmem:[%s4440_s29 + $0x1c] sm:$0xf] %vm976_vm2, %v3383_v35  ;;  %v3000_v42 = vadd.f32 %v4424_v44, %v2992_v37  ;;  %v2986_v43 = vmul.f32 %v4074_v60, %v4827_v14 }
 0xc28   : > { %3344 = vst.msk [vmem:[%s4440_s29 + $0xc] sm:$0xf] %vm976_vm2, %v3382_v38  ;;  %v2999_v17 = vadd.f32 %v4424_v44, %v2991_v40  ;;  %v2985_v47 = vmul.f32 %v4076_v21, %v4830_v57  ;;  %v4083_v44 = vld [vmem:[%s4955_s5] ss:$0 sm:$0xff] }
 0xc29   : > { %v3385_v50 = vpack.c.bf16 %v3000_v42, %v3000_v42  ;;  %v2994_v36 = vmul.f32 %v4082_v51, %v2986_v43 }
 0xc2a   : > { %v4078_v3 = vpop.eup %4077  ;;  %v3384_v6 = vpack.c.bf16 %v2999_v17, %v2999_v17  ;;  %v2993_v53 = vmul.f32 %v4082_v51, %v2985_v47 }
 0xc2b   : > { %v4080_v5 = vpop.eup %4079  ;;  %3347 = vst.msk [vmem:[%s4440_s29 + $0x3c] sm:$0xf] %vm976_vm2, %v3385_v50  ;;  %v3002_v14 = vadd.f32 %v4083_v44, %v2994_v36  ;;  %v2988_v57 = vmul.f32 %v4078_v3, %v4839_v62 }
 0xc2c   : > { %3346 = vst.msk [vmem:[%s4440_s29 + $0x2c] sm:$0xf] %vm976_vm2, %v3384_v6  ;;  %v3001_v2 = vadd.f32 %v4083_v44, %v2993_v53  ;;  %v2987_v11 = vmul.f32 %v4080_v5, %v4842_v52 }
 0xc2d   : > { %v3387_v59 = vpack.c.bf16 %v3002_v14, %v3002_v14  ;;  %v2996_v30 = vmul.f32 %v4082_v51, %v2988_v57 }
 0xc2e   : > { %v3386_v28 = vpack.c.bf16 %v3001_v2, %v3001_v2  ;;  %v2995_v55 = vmul.f32 %v4082_v51, %v2987_v11 }
 0xc2f   : > { %3349 = vst.msk [vmem:[%s4440_s29 + $0x5c] sm:$0xf] %vm976_vm2, %v3387_v59  ;;  %v3004_v29 = vadd.f32 %v4083_v44, %v2996_v30 }
 0xc30   : > { %3348 = vst.msk [vmem:[%s4440_s29 + $0x4c] sm:$0xf] %vm976_vm2, %v3386_v28  ;;  %v3003_v62 = vadd.f32 %v4083_v44, %v2995_v55 }
 0xc31   : > { %v3389_v23 = vpack.c.bf16 %v3004_v29, %v3004_v29 }
 0xc32   : > { %v3388_v52 = vpack.c.bf16 %v3003_v62, %v3003_v62 }
 0xc33   : > { %3351 = vst.msk [vmem:[%s4440_s29 + $0x7c] sm:$0xf] %vm976_vm2, %v3389_v23 }
 0xc34   : > { %3350 = vst.msk [vmem:[%s4440_s29 + $0x6c] sm:$0xf] %vm976_vm2, %v3388_v52 }
 0xc35   : > { %4097 = shalt.err (!%p4094_p3)
}
 0xc36   : > { %s4098_s17 = scalar_lea.hbm %s4899_s14, 2048  ;;  %s4102_s26 = scalar_lea.hbm %s4956_s6, 4096 }
 0xc37   : > { %p4099_p4 = scmp.ne.s32.totalorder %s4899_s14, %s4098_s17  ;;  %p4103_p9 = scmp.lt.u32.totalorder %s4899_s14, %s4956_s6 }
 0xc38   : > { %p4104_p10 = scmp.lt.u32.totalorder %s4102_s26, %s4098_s17  ;;  %p4106_p12 = scmp.lt.u32.totalorder %s4098_s17, %s4899_s14 }
 0xc39   : > { %p4100_p7 = pnand %p4099_p4, %p4224_p5 }
 0xc3a   : > { %p4105_p11 = por %p4104_p10, %p4103_p9 }
 0xc3b   : > { %p4101_p8 = pneg %p4100_p7 }
 0xc3c   : > { %p4107_p13 = por %p4106_p12, %p4105_p11 }
 0xc3e   : > { %p4108_p0 = pnand %p4107_p13, %p4101_p8 }
 0xc40   : > { %4111 = shalt.err (!%p4108_p0)
}
 0xc41   : > { %s4149_s10 = smov 64   ;;  %s4150_s12 = smov 4  }
 0xc42   : > { %3968 = dma.vmem_to_hbm [thread:$0]  (%p4224_p5), %s4901_s11, 2048, %s4899_s14, %s4909_s25, %s4149_s10, %s4149_s10, %s4150_s12  }
 0xc43 PF: > { %p3974_p1 = scmp.ge.s32.totalorder %s4146_s24, 2  ;;  %s3076_s13 = sand.u32 1, %s4134_s21  }
 0xc44   : > { %s3077_s15 = scalar_lea.sflag [#allocation3], %s3076_s13 }
 0xc45   : > { %p3971_p2 = pnand %p3974_p1, %p4228_p6 }
 0xc47   : > { %4129 = dma.done.wait (!%p3971_p2), %s3077_s15, 2048  }
 0xc48   : > { %4131 = vsyncadd (!%p3971_p2), %s3077_s15, 4294965248  ;;  %p16_p3 = scmp.ge.s32.totalorder %s4211_s27, 4   ;;  %s4959_s21 = smov %s4138_s22 }
 0xc49   : > { %s4960_s22 = smov %s4142_s23  ;;  %s4961_s23 = smov %s4222_s30 }
 0xc4a   : > { %s4962_s24 = smov %s4211_s27  ;;  %18 = sbr.rel (!%p16_p3) target bundleno = 3 (0x3), region = 85 }
 0xc51   :  { %3082 = vsyncpa [#allocation3], 1 }
 0xc52   :  { %3084 = vsyncpa [#allocation3 + $0x1], 1 }

</bundles_post_ra>
